<compile_context>
chip_gen: v5e
topology: v5e:2x2
jax: 0.10.0
libtpu: 0.0.40
codegen_flags: <defaults>
</compile_context>

<pallas_src>
import functools
import numpy as np
import jax
import jax.numpy as jnp
from jax.experimental import pallas as pl
from jax.experimental.pallas import tpu as pltpu

BN_EPS = 1e-5


# ------------------------- one-time weight preprocessing -------------------------

def fold_bn(bn):
    gamma, beta, mean, var = bn
    scale = gamma / jnp.sqrt(var + BN_EPS)
    bias = beta - mean * scale
    return scale, bias


def interp_matrix(out_size, in_size):
    # align_corners=True bilinear interpolation matrix (numpy, trace-time const).
    A = np.zeros((out_size, in_size), np.float32)
    if out_size == 1:
        A[0, 0] = 1.0
        return A
    scale = (in_size - 1) / (out_size - 1)
    for o in range(out_size):
        src = o * scale
        i0 = min(int(np.floor(src)), in_size - 1)
        i1 = min(i0 + 1, in_size - 1)
        w = src - i0
        A[o, i0] += 1.0 - w
        A[o, i1] += w
    return A


def _col_selection(wp_in, w_out, stride):
    # Sel[dx, xin_padded, xout] = 1 iff xin_padded == stride*xout + dx
    sel = np.zeros((3, wp_in, w_out), np.float32)
    for dx in range(3):
        for xo in range(w_out):
            xi = stride * xo + dx
            if 0 <= xi < wp_in:
                sel[dx, xi, xo] = 1.0
    return sel


def _row_conv_mats(w_hwio, wp_in, w_out, stride, pad_out):
    # 3x3 conv (pad=1) column taps + channel mixing folded into one matrix per
    # row-tap dy:  (wp_in*Cin, [wp_out]*Cout).  Output padding columns are zero.
    _, _, cin, cout = w_hwio.shape
    sel = jnp.asarray(_col_selection(wp_in, w_out, stride))
    mats = []
    for dy in range(3):
        m = jnp.einsum('diq,dab->iaqb', sel, w_hwio[dy])     # (wp_in,Cin,w_out,Cout)
        m = m.reshape(wp_in * cin, w_out * cout)
        if pad_out:
            m = jnp.pad(m, ((0, 0), (cout, cout)))
        mats.append(m)
    return jnp.stack(mats, axis=0)                           # (3, wp_in*Cin, cols)


def _bn_rows(bn, w_out, pad_out):
    # folded-BN scale/bias as lane row-vectors; zero on padded columns so the
    # zero-padding of the layout is preserved through the affine.
    scale, bias = fold_bn(bn)
    c = scale.shape[0]
    s = jnp.tile(scale, w_out)
    b = jnp.tile(bias, w_out)
    if pad_out:
        s = jnp.pad(s, (c, c))
        b = jnp.pad(b, (c, c))
    return s.reshape(1, -1), b.reshape(1, -1)


def _row_select_stride2(h_out, h_in):
    # S[dy, y, r] = 1 iff interior row r == 2*y + dy - 1 (padded row 0 dropped).
    s = np.zeros((3, h_out, h_in), np.float32)
    for dy in range(3):
        for y in range(h_out):
            r = 2 * y + dy - 1
            if 0 <= r < h_in:
                s[dy, y, r] = 1.0
    return jnp.asarray(s)


def prepare_module(params, in_shapes):
    """Build all kernel-ready constant operands once (called at init)."""
    (_, H0, W0, C0), (_, H1, W1, C1) = in_shapes
    Wp0, Wp1 = W0 + 2, W1 + 2
    br0, br1 = params['branch0'], params['branch1']

    w0a = _row_conv_mats(br0['w1'], Wp0, W0, stride=1, pad_out=True)
    s0a, b0a = _bn_rows(br0['bn1'], W0, pad_out=True)
    w0b = _row_conv_mats(br0['w2'], Wp0, W0, stride=1, pad_out=True)
    s0b, b0b = _bn_rows(br0['bn2'], W0, pad_out=True)
    w1a = _row_conv_mats(br1['w1'], Wp1, W1, stride=1, pad_out=True)
    s1a, b1a = _bn_rows(br1['bn1'], W1, pad_out=True)
    w1b = _row_conv_mats(br1['w2'], Wp1, W1, stride=1, pad_out=True)
    s1b, b1b = _bn_rows(br1['bn2'], W1, pad_out=True)

    # fuse[0][1]: 1x1 conv C1->C0 (block-diag over columns) + BN
    w01 = params['fuse01_w'][0, 0]                                   # (C1, C0)
    wf01 = jnp.kron(jnp.eye(W1, dtype=jnp.float32), w01)             # (W1*C1, W1*C0)
    sf01, bf01 = _bn_rows(params['fuse01_bn'], W1, pad_out=False)

    # separable align_corners=True bilinear upsample (H1,W1) -> (H0,W0)
    ah = jnp.asarray(interp_matrix(H0, H1))                          # (H0, H1)
    aw = interp_matrix(W0, W1)                                       # (W0, W1) numpy
    bw = jnp.asarray(np.kron(aw.T, np.eye(C0, dtype=np.float32)))    # (W1*C0, W0*C0)

    # fuse[1][0]: 3x3 stride-2 conv C0->C1 + BN
    s2 = _row_select_stride2(H1, H0)                                 # (3, H1, H0)
    wf10 = _row_conv_mats(params['fuse10_w'], Wp0, W1, stride=2, pad_out=False)
    sf10, bf10 = _bn_rows(params['fuse10_bn'], W1, pad_out=False)

    return (w0a, s0a, b0a, w0b, s0b, b0b,
            w1a, s1a, b1a, w1b, s1b, b1b,
            wf01, sf01, bf01, ah, bw,
            s2, wf10, sf10, bf10)


# ------------------------- fused Pallas kernel -------------------------

def _hr_module_kernel(x0p_ref, x1p_ref,
                      w0a_ref, s0a_ref, b0a_ref, w0b_ref, s0b_ref, b0b_ref,
                      w1a_ref, s1a_ref, b1a_ref, w1b_ref, s1b_ref, b1b_ref,
                      wf01_ref, sf01_ref, bf01_ref, ah_ref, bw_ref,
                      s2_ref, wf10_ref, sf10_ref, bf10_ref,
                      out0_ref, out1_ref,
                      y0_ref, y1_ref,
                      *, N, H0, W0, C0, H1, W1, C1):
    f32 = jnp.float32
    Hp0, Wp0 = H0 + 2, W0 + 2
    Hp1, Wp1 = H1 + 2, W1 + 2

    def conv3_rows(in_ref, row0, rows, w_ref, s_ref, b_ref):
        # stride-1 3x3 conv for one image: 3 row-shifted matmuls against
        # precomputed (padded-cols -> padded-cols) operators + folded BN affine.
        acc = jnp.dot(in_ref[row0:row0 + rows, :], w_ref[0],
                      preferred_element_type=f32)
        acc = acc + jnp.dot(in_ref[row0 + 1:row0 + 1 + rows, :], w_ref[1],
                            preferred_element_type=f32)
        acc = acc + jnp.dot(in_ref[row0 + 2:row0 + 2 + rows, :], w_ref[2],
                            preferred_element_type=f32)
        return acc * s_ref[...] + b_ref[...]

    # zero scratch once so per-image zero padding rows stay zero
    y0_ref[...] = jnp.zeros(y0_ref.shape, f32)
    y1_ref[...] = jnp.zeros(y1_ref.shape, f32)

    x0b = []   # per-image BasicBlock outputs, (H, (W+2)*C), zero padded cols
    x1b = []
    for n in range(N):
        # ---- branch 0 BasicBlock ----
        r0 = n * Hp0
        t = jnp.maximum(conv3_rows(x0p_ref, r0, H0, w0a_ref, s0a_ref, b0a_ref), 0.0)
        y0_ref[r0 + 1:r0 + 1 + H0, :] = t
        t = conv3_rows(y0_ref, r0, H0, w0b_ref, s0b_ref, b0b_ref)
        t = t + x0p_ref[r0 + 1:r0 + 1 + H0, :]          # identity residual
        x0b.append(jnp.maximum(t, 0.0))

        # ---- branch 1 BasicBlock ----
        r1 = n * Hp1
        t = jnp.maximum(conv3_rows(x1p_ref, r1, H1, w1a_ref, s1a_ref, b1a_ref), 0.0)
        y1_ref[r1 + 1:r1 + 1 + H1, :] = t
        t = conv3_rows(y1_ref, r1, H1, w1b_ref, s1b_ref, b1b_ref)
        t = t + x1p_ref[r1 + 1:r1 + 1 + H1, :]
        x1b.append(jnp.maximum(t, 0.0))

    for n in range(N):
        # ---- fuse output 0: relu(x0b + upsample(bn(conv1x1(x1b)))) ----
        x1b_int = x1b[n][:, C1:(Wp1 - 1) * C1]                          # (H1, W1*C1)
        z = jnp.dot(x1b_int, wf01_ref[...], preferred_element_type=f32)
        z = z * sf01_ref[...] + bf01_ref[...]                           # (H1, W1*C0)
        up = jnp.dot(ah_ref[...], z, preferred_element_type=f32)        # (H0, W1*C0)
        up = jnp.dot(up, bw_ref[...], preferred_element_type=f32)       # (H0, W0*C0)
        base = x0b[n][:, C0:(Wp0 - 1) * C0]                             # (H0, W0*C0)
        out0_ref[:, n * W0 * C0:(n + 1) * W0 * C0] = jnp.maximum(base + up, 0.0)

        # ---- fuse output 1: relu(bn(conv3x3_s2(x0b)) + x1b) ----
        rows = jnp.dot(s2_ref[0], x0b[n], preferred_element_type=f32)   # (H1, Wp0*C0)
        acc = jnp.dot(rows, wf10_ref[0], preferred_element_type=f32)    # (H1, W1*C1)
        for dy in (1, 2):
            rows = jnp.dot(s2_ref[dy], x0b[n], preferred_element_type=f32)
            acc = acc + jnp.dot(rows, wf10_ref[dy], preferred_element_type=f32)
        pre = acc * sf10_ref[...] + bf10_ref[...]
        res = x1b[n][:, C1:(Wp1 - 1) * C1]
        out1_ref[:, n * W1 * C1:(n + 1) * W1 * C1] = jnp.maximum(pre + res, 0.0)


# ------------------------- module forward (wrapper) -------------------------

def hr_module_forward(x0_nhwc, x1_nhwc, prep):
    N, H0, W0, C0 = x0_nhwc.shape
    _, H1, W1, C1 = x1_nhwc.shape
    Hp0, Wp0, Hp1, Wp1 = H0 + 2, W0 + 2, H1 + 2, W1 + 2

    # fold the spatial zero padding into the 2D row layout once per input
    x0p = jnp.pad(x0_nhwc, ((0, 0), (1, 1), (1, 1), (0, 0))).reshape(N * Hp0, Wp0 * C0)
    x1p = jnp.pad(x1_nhwc, ((0, 0), (1, 1), (1, 1), (0, 0))).reshape(N * Hp1, Wp1 * C1)

    operands = (x0p, x1p) + tuple(prep)
    kernel = functools.partial(_hr_module_kernel, N=N, H0=H0, W0=W0, C0=C0,
                               H1=H1, W1=W1, C1=C1)
    vspec = pl.BlockSpec(memory_space=pltpu.MemorySpace.VMEM)

    out0, out1 = pl.pallas_call(
        kernel,
        out_shape=(jax.ShapeDtypeStruct((H0, N * W0 * C0), jnp.float32),
                   jax.ShapeDtypeStruct((H1, N * W1 * C1), jnp.float32)),
        in_specs=[vspec] * len(operands),
        out_specs=(vspec, vspec),
        scratch_shapes=[pltpu.VMEM((N * Hp0, Wp0 * C0), jnp.float32),
                        pltpu.VMEM((N * Hp1, Wp1 * C1), jnp.float32)],
    )(*operands)

    # (H, N*W*C) lane-dense outputs -> NHWC
    o0 = out0.reshape(H0, N, W0, C0).transpose(1, 0, 2, 3)
    o1 = out1.reshape(H1, N, W1, C1).transpose(1, 0, 2, 3)
    return [o0, o1]


# ------------------------- pure-JAX reference -------------------------

def _ref_conv_bn(x, w, bn, stride, pad, relu, residual=None):
    y = jax.lax.conv_general_dilated(
        x, w, (stride, stride), [(pad, pad), (pad, pad)],
        dimension_numbers=('NHWC', 'HWIO', 'NHWC'),
        precision=jax.lax.Precision.HIGHEST)
    s, b = fold_bn(bn)
    y = y * s + b
    if residual is not None:
        y = y + residual
    return jnp.maximum(y, 0.0) if relu else y


def ref_forward(xs, params):
    x0, x1 = xs
    b0, b1 = params['branch0'], params['branch1']
    y = _ref_conv_bn(x0, b0['w1'], b0['bn1'], 1, 1, True)
    x0b = _ref_conv_bn(y, b0['w2'], b0['bn2'], 1, 1, True, residual=x0)
    y = _ref_conv_bn(x1, b1['w1'], b1['bn1'], 1, 1, True)
    x1b = _ref_conv_bn(y, b1['w2'], b1['bn2'], 1, 1, True, residual=x1)

    z01 = _ref_conv_bn(x1b, params['fuse01_w'], params['fuse01_bn'], 1, 0, False)
    Ah = jnp.asarray(interp_matrix(x0b.shape[1], z01.shape[1]))
    Aw = jnp.asarray(interp_matrix(x0b.shape[2], z01.shape[2]))
    up = jnp.einsum('oh,nhwc->nowc', Ah, z01, precision=jax.lax.Precision.HIGHEST)
    up = jnp.einsum('pw,nowc->nopc', Aw, up, precision=jax.lax.Precision.HIGHEST)
    out0 = jnp.maximum(x0b + up, 0.0)

    out1 = _ref_conv_bn(x0b, params['fuse10_w'], params['fuse10_bn'], 2, 1, True,
                        residual=x1b)
    return [out0, out1]


# ------------------------- parameter init -------------------------

def init_params(key):
    ks = jax.random.split(key, 12)

    def conv_w(k, kh, kw, cin, cout):
        return 0.1 * jax.random.normal(k, (kh, kw, cin, cout), jnp.float32)

    def bn_p(k, c):
        k1, k2, k3, k4 = jax.random.split(k, 4)
        gamma = 1.0 + 0.1 * jax.random.normal(k1, (c,), jnp.float32)
        beta = 0.1 * jax.random.normal(k2, (c,), jnp.float32)
        mean = 0.1 * jax.random.normal(k3, (c,), jnp.float32)
        var = 1.0 + 0.1 * jnp.abs(jax.random.normal(k4, (c,), jnp.float32))
        return (gamma, beta, mean, var)

    C0, C1 = 4, 8
    return {
        'branch0': {'w1': conv_w(ks[0], 3, 3, C0, C0), 'bn1': bn_p(ks[1], C0),
                    'w2': conv_w(ks[2], 3, 3, C0, C0), 'bn2': bn_p(ks[3], C0)},
        'branch1': {'w1': conv_w(ks[4], 3, 3, C1, C1), 'bn1': bn_p(ks[5], C1),
                    'w2': conv_w(ks[6], 3, 3, C1, C1), 'bn2': bn_p(ks[7], C1)},
        'fuse01_w': conv_w(ks[8], 1, 1, C1, C0), 'fuse01_bn': bn_p(ks[9], C0),
        'fuse10_w': conv_w(ks[10], 3, 3, C0, C1), 'fuse10_bn': bn_p(ks[11], C1),
    }


if __name__ == "__main__":
    key = jax.random.PRNGKey(0)
    kp, kx0, kx1 = jax.random.split(key, 3)
    params = init_params(kp)

    # PyTorch-style NCHW inputs (branch 0: full res, branch 1: half res).
    x0_nchw = jax.random.normal(kx0, (2, 4, 16, 16), jnp.float32)
    x1_nchw = jax.random.normal(kx1, (2, 8, 8, 8), jnp.float32)
    x0 = jnp.transpose(x0_nchw, (0, 2, 3, 1))  # -> NHWC
    x1 = jnp.transpose(x1_nchw, (0, 2, 3, 1))  # -> NHWC

    # one-time weight preprocessing: fold BN, build row-operator matrices
    prep = prepare_module(params, (x0.shape, x1.shape))

    fwd = jax.jit(hr_module_forward)
    outs = fwd(x0, x1, prep)
    outs = [jax.block_until_ready(o) for o in outs]

    refs = ref_forward([x0, x1], params)
    for o, r in zip(outs, refs):
        assert o.shape == r.shape
        np.testing.assert_allclose(np.asarray(o), np.asarray(r), atol=1e-2, rtol=1e-2)

    print("KERNEL_OK")
</pallas_src>

<mosaic_0001>
module attributes {stable_mosaic.version = 11 : i64} {
  func.func @_hr_module_kernel(%arg0: memref<36x72xf32, #tpu.memory_space<vmem>>, %arg1: memref<20x80xf32, #tpu.memory_space<vmem>>, %arg2: memref<3x72x72xf32, #tpu.memory_space<vmem>>, %arg3: memref<1x72xf32, #tpu.memory_space<vmem>>, %arg4: memref<1x72xf32, #tpu.memory_space<vmem>>, %arg5: memref<3x72x72xf32, #tpu.memory_space<vmem>>, %arg6: memref<1x72xf32, #tpu.memory_space<vmem>>, %arg7: memref<1x72xf32, #tpu.memory_space<vmem>>, %arg8: memref<3x80x80xf32, #tpu.memory_space<vmem>>, %arg9: memref<1x80xf32, #tpu.memory_space<vmem>>, %arg10: memref<1x80xf32, #tpu.memory_space<vmem>>, %arg11: memref<3x80x80xf32, #tpu.memory_space<vmem>>, %arg12: memref<1x80xf32, #tpu.memory_space<vmem>>, %arg13: memref<1x80xf32, #tpu.memory_space<vmem>>, %arg14: memref<64x32xf32, #tpu.memory_space<vmem>>, %arg15: memref<1x32xf32, #tpu.memory_space<vmem>>, %arg16: memref<1x32xf32, #tpu.memory_space<vmem>>, %arg17: memref<16x8xf32, #tpu.memory_space<vmem>>, %arg18: memref<32x64xf32, #tpu.memory_space<vmem>>, %arg19: memref<3x8x16xf32, #tpu.memory_space<vmem>>, %arg20: memref<3x72x64xf32, #tpu.memory_space<vmem>>, %arg21: memref<1x64xf32, #tpu.memory_space<vmem>>, %arg22: memref<1x64xf32, #tpu.memory_space<vmem>>, %arg23: memref<16x128xf32, #tpu.memory_space<vmem>>, %arg24: memref<8x128xf32, #tpu.memory_space<vmem>>, %arg25: memref<36x72xf32, #tpu.memory_space<vmem>>, %arg26: memref<20x80xf32, #tpu.memory_space<vmem>>) attributes {dimension_semantics = [], scalar_prefetch = 0 : i64, scratch_operands = 2 : i64, tpu.core_type = #tpu.core_type<tc>} {
    %cst = arith.constant 0.000000e+00 : f32
    %0 = vector.broadcast %cst : f32 to vector<36x72xf32>
    %c0 = arith.constant 0 : index
    %c0_0 = arith.constant 0 : index
    %1 = vector.load %arg25[%c0, %c0_0] : memref<36x72xf32, #tpu.memory_space<vmem>>, vector<36x72xf32>
    tpu.vector_store %arg25[%c0, %c0_0], %0 {strides = array<i32>} : memref<36x72xf32, #tpu.memory_space<vmem>>, vector<36x72xf32>,
    %cst_1 = arith.constant 0.000000e+00 : f32
    %2 = vector.broadcast %cst_1 : f32 to vector<20x80xf32>
    %c0_2 = arith.constant 0 : index
    %c0_3 = arith.constant 0 : index
    %3 = vector.load %arg26[%c0_2, %c0_3] : memref<20x80xf32, #tpu.memory_space<vmem>>, vector<20x80xf32>
    tpu.vector_store %arg26[%c0_2, %c0_3], %2 {strides = array<i32>} : memref<20x80xf32, #tpu.memory_space<vmem>>, vector<20x80xf32>,
    %c0_4 = arith.constant 0 : index
    %c0_5 = arith.constant 0 : index
    %4 = vector.load %arg0[%c0_4, %c0_5] : memref<36x72xf32, #tpu.memory_space<vmem>>, vector<16x72xf32>
    %c0_6 = arith.constant 0 : index
    %c0_7 = arith.constant 0 : index
    %c0_8 = arith.constant 0 : index
    %5 = vector.load %arg2[%c0_6, %c0_7, %c0_8] : memref<3x72x72xf32, #tpu.memory_space<vmem>>, vector<1x72x72xf32>
    %6 = vector.shape_cast %5 : vector<1x72x72xf32> to vector<72x72xf32>
    %cst_9 = arith.constant dense<0.000000e+00> : vector<16x72xf32>
    %7 = tpu.matmul %4, %6, %cst_9 {dimension_numbers = #tpu.dot_dimension_numbers<[1], [0], [0], [1], [0, 0, 1, 1], [], []>} : vector<16x72xf32>, vector<72x72xf32>, vector<16x72xf32> -> vector<16x72xf32>
    %c1 = arith.constant 1 : index
    %c0_10 = arith.constant 0 : index
    %8 = vector.load %arg0[%c1, %c0_10] : memref<36x72xf32, #tpu.memory_space<vmem>>, vector<16x72xf32>
    %c1_11 = arith.constant 1 : index
    %c0_12 = arith.constant 0 : index
    %c0_13 = arith.constant 0 : index
    %9 = vector.load %arg2[%c1_11, %c0_12, %c0_13] : memref<3x72x72xf32, #tpu.memory_space<vmem>>, vector<1x72x72xf32>
    %10 = vector.shape_cast %9 : vector<1x72x72xf32> to vector<72x72xf32>
    %cst_14 = arith.constant dense<0.000000e+00> : vector<16x72xf32>
    %11 = tpu.matmul %8, %10, %cst_14 {dimension_numbers = #tpu.dot_dimension_numbers<[1], [0], [0], [1], [0, 0, 1, 1], [], []>} : vector<16x72xf32>, vector<72x72xf32>, vector<16x72xf32> -> vector<16x72xf32>
    %12 = arith.addf %7, %11 : vector<16x72xf32>
    %c2 = arith.constant 2 : index
    %c0_15 = arith.constant 0 : index
    %13 = vector.load %arg0[%c2, %c0_15] : memref<36x72xf32, #tpu.memory_space<vmem>>, vector<16x72xf32>
    %c2_16 = arith.constant 2 : index
    %c0_17 = arith.constant 0 : index
    %c0_18 = arith.constant 0 : index
    %14 = vector.load %arg2[%c2_16, %c0_17, %c0_18] : memref<3x72x72xf32, #tpu.memory_space<vmem>>, vector<1x72x72xf32>
    %15 = vector.shape_cast %14 : vector<1x72x72xf32> to vector<72x72xf32>
    %cst_19 = arith.constant dense<0.000000e+00> : vector<16x72xf32>
    %16 = tpu.matmul %13, %15, %cst_19 {dimension_numbers = #tpu.dot_dimension_numbers<[1], [0], [0], [1], [0, 0, 1, 1], [], []>} : vector<16x72xf32>, vector<72x72xf32>, vector<16x72xf32> -> vector<16x72xf32>
    %17 = arith.addf %12, %16 : vector<16x72xf32>
    %c0_20 = arith.constant 0 : index
    %c0_21 = arith.constant 0 : index
    %18 = vector.load %arg3[%c0_20, %c0_21] : memref<1x72xf32, #tpu.memory_space<vmem>>, vector<1x72xf32>
    %19 = vector.broadcast %18 : vector<1x72xf32> to vector<16x72xf32>
    %20 = arith.mulf %17, %19 : vector<16x72xf32>
    %c0_22 = arith.constant 0 : index
    %c0_23 = arith.constant 0 : index
    %21 = vector.load %arg4[%c0_22, %c0_23] : memref<1x72xf32, #tpu.memory_space<vmem>>, vector<1x72xf32>
    %22 = vector.broadcast %21 : vector<1x72xf32> to vector<16x72xf32>
    %23 = arith.addf %20, %22 : vector<16x72xf32>
    %cst_24 = arith.constant 0.000000e+00 : f32
    %24 = vector.broadcast %cst_24 : f32 to vector<16x72xf32>
    %25 = arith.maximumf %23, %24 : vector<16x72xf32>
    %c1_25 = arith.constant 1 : index
    %c0_26 = arith.constant 0 : index
    %26 = vector.load %arg25[%c1_25, %c0_26] : memref<36x72xf32, #tpu.memory_space<vmem>>, vector<16x72xf32>
    tpu.vector_store %arg25[%c1_25, %c0_26], %25 {strides = array<i32>} : memref<36x72xf32, #tpu.memory_space<vmem>>, vector<16x72xf32>,
    %c0_27 = arith.constant 0 : index
    %c0_28 = arith.constant 0 : index
    %27 = vector.load %arg25[%c0_27, %c0_28] : memref<36x72xf32, #tpu.memory_space<vmem>>, vector<16x72xf32>
    %c0_29 = arith.constant 0 : index
    %c0_30 = arith.constant 0 : index
    %c0_31 = arith.constant 0 : index
    %28 = vector.load %arg5[%c0_29, %c0_30, %c0_31] : memref<3x72x72xf32, #tpu.memory_space<vmem>>, vector<1x72x72xf32>
    %29 = vector.shape_cast %28 : vector<1x72x72xf32> to vector<72x72xf32>
    %cst_32 = arith.constant dense<0.000000e+00> : vector<16x72xf32>
    %30 = tpu.matmul %27, %29, %cst_32 {dimension_numbers = #tpu.dot_dimension_numbers<[1], [0], [0], [1], [0, 0, 1, 1], [], []>} : vector<16x72xf32>, vector<72x72xf32>, vector<16x72xf32> -> vector<16x72xf32>
    %c1_33 = arith.constant 1 : index
    %c0_34 = arith.constant 0 : index
    %31 = vector.load %arg25[%c1_33, %c0_34] : memref<36x72xf32, #tpu.memory_space<vmem>>, vector<16x72xf32>
    %c1_35 = arith.constant 1 : index
    %c0_36 = arith.constant 0 : index
    %c0_37 = arith.constant 0 : index
    %32 = vector.load %arg5[%c1_35, %c0_36, %c0_37] : memref<3x72x72xf32, #tpu.memory_space<vmem>>, vector<1x72x72xf32>
    %33 = vector.shape_cast %32 : vector<1x72x72xf32> to vector<72x72xf32>
    %cst_38 = arith.constant dense<0.000000e+00> : vector<16x72xf32>
    %34 = tpu.matmul %31, %33, %cst_38 {dimension_numbers = #tpu.dot_dimension_numbers<[1], [0], [0], [1], [0, 0, 1, 1], [], []>} : vector<16x72xf32>, vector<72x72xf32>, vector<16x72xf32> -> vector<16x72xf32>
    %35 = arith.addf %30, %34 : vector<16x72xf32>
    %c2_39 = arith.constant 2 : index
    %c0_40 = arith.constant 0 : index
    %36 = vector.load %arg25[%c2_39, %c0_40] : memref<36x72xf32, #tpu.memory_space<vmem>>, vector<16x72xf32>
    %c2_41 = arith.constant 2 : index
    %c0_42 = arith.constant 0 : index
    %c0_43 = arith.constant 0 : index
    %37 = vector.load %arg5[%c2_41, %c0_42, %c0_43] : memref<3x72x72xf32, #tpu.memory_space<vmem>>, vector<1x72x72xf32>
    %38 = vector.shape_cast %37 : vector<1x72x72xf32> to vector<72x72xf32>
    %cst_44 = arith.constant dense<0.000000e+00> : vector<16x72xf32>
    %39 = tpu.matmul %36, %38, %cst_44 {dimension_numbers = #tpu.dot_dimension_numbers<[1], [0], [0], [1], [0, 0, 1, 1], [], []>} : vector<16x72xf32>, vector<72x72xf32>, vector<16x72xf32> -> vector<16x72xf32>
    %40 = arith.addf %35, %39 : vector<16x72xf32>
    %c0_45 = arith.constant 0 : index
    %c0_46 = arith.constant 0 : index
    %41 = vector.load %arg6[%c0_45, %c0_46] : memref<1x72xf32, #tpu.memory_space<vmem>>, vector<1x72xf32>
    %42 = vector.broadcast %41 : vector<1x72xf32> to vector<16x72xf32>
    %43 = arith.mulf %40, %42 : vector<16x72xf32>
    %c0_47 = arith.constant 0 : index
    %c0_48 = arith.constant 0 : index
    %44 = vector.load %arg7[%c0_47, %c0_48] : memref<1x72xf32, #tpu.memory_space<vmem>>, vector<1x72xf32>
    %45 = vector.broadcast %44 : vector<1x72xf32> to vector<16x72xf32>
    %46 = arith.addf %43, %45 : vector<16x72xf32>
    %c1_49 = arith.constant 1 : index
    %c0_50 = arith.constant 0 : index
    %47 = vector.load %arg0[%c1_49, %c0_50] : memref<36x72xf32, #tpu.memory_space<vmem>>, vector<16x72xf32>
    %48 = arith.addf %46, %47 : vector<16x72xf32>
    %cst_51 = arith.constant 0.000000e+00 : f32
    %49 = vector.broadcast %cst_51 : f32 to vector<16x72xf32>
    %50 = arith.maximumf %48, %49 : vector<16x72xf32>
    %c0_52 = arith.constant 0 : index
    %c0_53 = arith.constant 0 : index
    %51 = vector.load %arg1[%c0_52, %c0_53] : memref<20x80xf32, #tpu.memory_space<vmem>>, vector<8x80xf32>
    %c0_54 = arith.constant 0 : index
    %c0_55 = arith.constant 0 : index
    %c0_56 = arith.constant 0 : index
    %52 = vector.load %arg8[%c0_54, %c0_55, %c0_56] : memref<3x80x80xf32, #tpu.memory_space<vmem>>, vector<1x80x80xf32>
    %53 = vector.shape_cast %52 : vector<1x80x80xf32> to vector<80x80xf32>
    %cst_57 = arith.constant dense<0.000000e+00> : vector<8x80xf32>
    %54 = tpu.matmul %51, %53, %cst_57 {dimension_numbers = #tpu.dot_dimension_numbers<[1], [0], [0], [1], [0, 0, 1, 1], [], []>} : vector<8x80xf32>, vector<80x80xf32>, vector<8x80xf32> -> vector<8x80xf32>
    %c1_58 = arith.constant 1 : index
    %c0_59 = arith.constant 0 : index
    %55 = vector.load %arg1[%c1_58, %c0_59] : memref<20x80xf32, #tpu.memory_space<vmem>>, vector<8x80xf32>
    %c1_60 = arith.constant 1 : index
    %c0_61 = arith.constant 0 : index
    %c0_62 = arith.constant 0 : index
    %56 = vector.load %arg8[%c1_60, %c0_61, %c0_62] : memref<3x80x80xf32, #tpu.memory_space<vmem>>, vector<1x80x80xf32>
    %57 = vector.shape_cast %56 : vector<1x80x80xf32> to vector<80x80xf32>
    %cst_63 = arith.constant dense<0.000000e+00> : vector<8x80xf32>
    %58 = tpu.matmul %55, %57, %cst_63 {dimension_numbers = #tpu.dot_dimension_numbers<[1], [0], [0], [1], [0, 0, 1, 1], [], []>} : vector<8x80xf32>, vector<80x80xf32>, vector<8x80xf32> -> vector<8x80xf32>
    %59 = arith.addf %54, %58 : vector<8x80xf32>
    %c2_64 = arith.constant 2 : index
    %c0_65 = arith.constant 0 : index
    %60 = vector.load %arg1[%c2_64, %c0_65] : memref<20x80xf32, #tpu.memory_space<vmem>>, vector<8x80xf32>
    %c2_66 = arith.constant 2 : index
    %c0_67 = arith.constant 0 : index
    %c0_68 = arith.constant 0 : index
    %61 = vector.load %arg8[%c2_66, %c0_67, %c0_68] : memref<3x80x80xf32, #tpu.memory_space<vmem>>, vector<1x80x80xf32>
    %62 = vector.shape_cast %61 : vector<1x80x80xf32> to vector<80x80xf32>
    %cst_69 = arith.constant dense<0.000000e+00> : vector<8x80xf32>
    %63 = tpu.matmul %60, %62, %cst_69 {dimension_numbers = #tpu.dot_dimension_numbers<[1], [0], [0], [1], [0, 0, 1, 1], [], []>} : vector<8x80xf32>, vector<80x80xf32>, vector<8x80xf32> -> vector<8x80xf32>
    %64 = arith.addf %59, %63 : vector<8x80xf32>
    %c0_70 = arith.constant 0 : index
    %c0_71 = arith.constant 0 : index
    %65 = vector.load %arg9[%c0_70, %c0_71] : memref<1x80xf32, #tpu.memory_space<vmem>>, vector<1x80xf32>
    %66 = vector.broadcast %65 : vector<1x80xf32> to vector<8x80xf32>
    %67 = arith.mulf %64, %66 : vector<8x80xf32>
    %c0_72 = arith.constant 0 : index
    %c0_73 = arith.constant 0 : index
    %68 = vector.load %arg10[%c0_72, %c0_73] : memref<1x80xf32, #tpu.memory_space<vmem>>, vector<1x80xf32>
    %69 = vector.broadcast %68 : vector<1x80xf32> to vector<8x80xf32>
    %70 = arith.addf %67, %69 : vector<8x80xf32>
    %cst_74 = arith.constant 0.000000e+00 : f32
    %71 = vector.broadcast %cst_74 : f32 to vector<8x80xf32>
    %72 = arith.maximumf %70, %71 : vector<8x80xf32>
    %c1_75 = arith.constant 1 : index
    %c0_76 = arith.constant 0 : index
    %73 = vector.load %arg26[%c1_75, %c0_76] : memref<20x80xf32, #tpu.memory_space<vmem>>, vector<8x80xf32>
    tpu.vector_store %arg26[%c1_75, %c0_76], %72 {strides = array<i32>} : memref<20x80xf32, #tpu.memory_space<vmem>>, vector<8x80xf32>,
    %c0_77 = arith.constant 0 : index
    %c0_78 = arith.constant 0 : index
    %74 = vector.load %arg26[%c0_77, %c0_78] : memref<20x80xf32, #tpu.memory_space<vmem>>, vector<8x80xf32>
    %c0_79 = arith.constant 0 : index
    %c0_80 = arith.constant 0 : index
    %c0_81 = arith.constant 0 : index
    %75 = vector.load %arg11[%c0_79, %c0_80, %c0_81] : memref<3x80x80xf32, #tpu.memory_space<vmem>>, vector<1x80x80xf32>
    %76 = vector.shape_cast %75 : vector<1x80x80xf32> to vector<80x80xf32>
    %cst_82 = arith.constant dense<0.000000e+00> : vector<8x80xf32>
    %77 = tpu.matmul %74, %76, %cst_82 {dimension_numbers = #tpu.dot_dimension_numbers<[1], [0], [0], [1], [0, 0, 1, 1], [], []>} : vector<8x80xf32>, vector<80x80xf32>, vector<8x80xf32> -> vector<8x80xf32>
    %c1_83 = arith.constant 1 : index
    %c0_84 = arith.constant 0 : index
    %78 = vector.load %arg26[%c1_83, %c0_84] : memref<20x80xf32, #tpu.memory_space<vmem>>, vector<8x80xf32>
    %c1_85 = arith.constant 1 : index
    %c0_86 = arith.constant 0 : index
    %c0_87 = arith.constant 0 : index
    %79 = vector.load %arg11[%c1_85, %c0_86, %c0_87] : memref<3x80x80xf32, #tpu.memory_space<vmem>>, vector<1x80x80xf32>
    %80 = vector.shape_cast %79 : vector<1x80x80xf32> to vector<80x80xf32>
    %cst_88 = arith.constant dense<0.000000e+00> : vector<8x80xf32>
    %81 = tpu.matmul %78, %80, %cst_88 {dimension_numbers = #tpu.dot_dimension_numbers<[1], [0], [0], [1], [0, 0, 1, 1], [], []>} : vector<8x80xf32>, vector<80x80xf32>, vector<8x80xf32> -> vector<8x80xf32>
    %82 = arith.addf %77, %81 : vector<8x80xf32>
    %c2_89 = arith.constant 2 : index
    %c0_90 = arith.constant 0 : index
    %83 = vector.load %arg26[%c2_89, %c0_90] : memref<20x80xf32, #tpu.memory_space<vmem>>, vector<8x80xf32>
    %c2_91 = arith.constant 2 : index
    %c0_92 = arith.constant 0 : index
    %c0_93 = arith.constant 0 : index
    %84 = vector.load %arg11[%c2_91, %c0_92, %c0_93] : memref<3x80x80xf32, #tpu.memory_space<vmem>>, vector<1x80x80xf32>
    %85 = vector.shape_cast %84 : vector<1x80x80xf32> to vector<80x80xf32>
    %cst_94 = arith.constant dense<0.000000e+00> : vector<8x80xf32>
    %86 = tpu.matmul %83, %85, %cst_94 {dimension_numbers = #tpu.dot_dimension_numbers<[1], [0], [0], [1], [0, 0, 1, 1], [], []>} : vector<8x80xf32>, vector<80x80xf32>, vector<8x80xf32> -> vector<8x80xf32>
    %87 = arith.addf %82, %86 : vector<8x80xf32>
    %c0_95 = arith.constant 0 : index
    %c0_96 = arith.constant 0 : index
    %88 = vector.load %arg12[%c0_95, %c0_96] : memref<1x80xf32, #tpu.memory_space<vmem>>, vector<1x80xf32>
    %89 = vector.broadcast %88 : vector<1x80xf32> to vector<8x80xf32>
    %90 = arith.mulf %87, %89 : vector<8x80xf32>
    %c0_97 = arith.constant 0 : index
    %c0_98 = arith.constant 0 : index
    %91 = vector.load %arg13[%c0_97, %c0_98] : memref<1x80xf32, #tpu.memory_space<vmem>>, vector<1x80xf32>
    %92 = vector.broadcast %91 : vector<1x80xf32> to vector<8x80xf32>
    %93 = arith.addf %90, %92 : vector<8x80xf32>
    %c1_99 = arith.constant 1 : index
    %c0_100 = arith.constant 0 : index
    %94 = vector.load %arg1[%c1_99, %c0_100] : memref<20x80xf32, #tpu.memory_space<vmem>>, vector<8x80xf32>
    %95 = arith.addf %93, %94 : vector<8x80xf32>
    %cst_101 = arith.constant 0.000000e+00 : f32
    %96 = vector.broadcast %cst_101 : f32 to vector<8x80xf32>
    %97 = arith.maximumf %95, %96 : vector<8x80xf32>
    %c18 = arith.constant 18 : index
    %c0_102 = arith.constant 0 : index
    %98 = vector.load %arg0[%c18, %c0_102] : memref<36x72xf32, #tpu.memory_space<vmem>>, vector<16x72xf32>
    %c0_103 = arith.constant 0 : index
    %c0_104 = arith.constant 0 : index
    %c0_105 = arith.constant 0 : index
    %99 = vector.load %arg2[%c0_103, %c0_104, %c0_105] : memref<3x72x72xf32, #tpu.memory_space<vmem>>, vector<1x72x72xf32>
    %100 = vector.shape_cast %99 : vector<1x72x72xf32> to vector<72x72xf32>
    %cst_106 = arith.constant dense<0.000000e+00> : vector<16x72xf32>
    %101 = tpu.matmul %98, %100, %cst_106 {dimension_numbers = #tpu.dot_dimension_numbers<[1], [0], [0], [1], [0, 0, 1, 1], [], []>} : vector<16x72xf32>, vector<72x72xf32>, vector<16x72xf32> -> vector<16x72xf32>
    %c19 = arith.constant 19 : index
    %c0_107 = arith.constant 0 : index
    %102 = vector.load %arg0[%c19, %c0_107] : memref<36x72xf32, #tpu.memory_space<vmem>>, vector<16x72xf32>
    %c1_108 = arith.constant 1 : index
    %c0_109 = arith.constant 0 : index
    %c0_110 = arith.constant 0 : index
    %103 = vector.load %arg2[%c1_108, %c0_109, %c0_110] : memref<3x72x72xf32, #tpu.memory_space<vmem>>, vector<1x72x72xf32>
    %104 = vector.shape_cast %103 : vector<1x72x72xf32> to vector<72x72xf32>
    %cst_111 = arith.constant dense<0.000000e+00> : vector<16x72xf32>
    %105 = tpu.matmul %102, %104, %cst_111 {dimension_numbers = #tpu.dot_dimension_numbers<[1], [0], [0], [1], [0, 0, 1, 1], [], []>} : vector<16x72xf32>, vector<72x72xf32>, vector<16x72xf32> -> vector<16x72xf32>
    %106 = arith.addf %101, %105 : vector<16x72xf32>
    %c20 = arith.constant 20 : index
    %c0_112 = arith.constant 0 : index
    %107 = vector.load %arg0[%c20, %c0_112] : memref<36x72xf32, #tpu.memory_space<vmem>>, vector<16x72xf32>
    %c2_113 = arith.constant 2 : index
    %c0_114 = arith.constant 0 : index
    %c0_115 = arith.constant 0 : index
    %108 = vector.load %arg2[%c2_113, %c0_114, %c0_115] : memref<3x72x72xf32, #tpu.memory_space<vmem>>, vector<1x72x72xf32>
    %109 = vector.shape_cast %108 : vector<1x72x72xf32> to vector<72x72xf32>
    %cst_116 = arith.constant dense<0.000000e+00> : vector<16x72xf32>
    %110 = tpu.matmul %107, %109, %cst_116 {dimension_numbers = #tpu.dot_dimension_numbers<[1], [0], [0], [1], [0, 0, 1, 1], [], []>} : vector<16x72xf32>, vector<72x72xf32>, vector<16x72xf32> -> vector<16x72xf32>
    %111 = arith.addf %106, %110 : vector<16x72xf32>
    %c0_117 = arith.constant 0 : index
    %c0_118 = arith.constant 0 : index
    %112 = vector.load %arg3[%c0_117, %c0_118] : memref<1x72xf32, #tpu.memory_space<vmem>>, vector<1x72xf32>
    %113 = vector.broadcast %112 : vector<1x72xf32> to vector<16x72xf32>
    %114 = arith.mulf %111, %113 : vector<16x72xf32>
    %c0_119 = arith.constant 0 : index
    %c0_120 = arith.constant 0 : index
    %115 = vector.load %arg4[%c0_119, %c0_120] : memref<1x72xf32, #tpu.memory_space<vmem>>, vector<1x72xf32>
    %116 = vector.broadcast %115 : vector<1x72xf32> to vector<16x72xf32>
    %117 = arith.addf %114, %116 : vector<16x72xf32>
    %cst_121 = arith.constant 0.000000e+00 : f32
    %118 = vector.broadcast %cst_121 : f32 to vector<16x72xf32>
    %119 = arith.maximumf %117, %118 : vector<16x72xf32>
    %c19_122 = arith.constant 19 : index
    %c0_123 = arith.constant 0 : index
    %120 = vector.load %arg25[%c19_122, %c0_123] : memref<36x72xf32, #tpu.memory_space<vmem>>, vector<16x72xf32>
    tpu.vector_store %arg25[%c19_122, %c0_123], %119 {strides = array<i32>} : memref<36x72xf32, #tpu.memory_space<vmem>>, vector<16x72xf32>,
    %c18_124 = arith.constant 18 : index
    %c0_125 = arith.constant 0 : index
    %121 = vector.load %arg25[%c18_124, %c0_125] : memref<36x72xf32, #tpu.memory_space<vmem>>, vector<16x72xf32>
    %c0_126 = arith.constant 0 : index
    %c0_127 = arith.constant 0 : index
    %c0_128 = arith.constant 0 : index
    %122 = vector.load %arg5[%c0_126, %c0_127, %c0_128] : memref<3x72x72xf32, #tpu.memory_space<vmem>>, vector<1x72x72xf32>
    %123 = vector.shape_cast %122 : vector<1x72x72xf32> to vector<72x72xf32>
    %cst_129 = arith.constant dense<0.000000e+00> : vector<16x72xf32>
    %124 = tpu.matmul %121, %123, %cst_129 {dimension_numbers = #tpu.dot_dimension_numbers<[1], [0], [0], [1], [0, 0, 1, 1], [], []>} : vector<16x72xf32>, vector<72x72xf32>, vector<16x72xf32> -> vector<16x72xf32>
    %c19_130 = arith.constant 19 : index
    %c0_131 = arith.constant 0 : index
    %125 = vector.load %arg25[%c19_130, %c0_131] : memref<36x72xf32, #tpu.memory_space<vmem>>, vector<16x72xf32>
    %c1_132 = arith.constant 1 : index
    %c0_133 = arith.constant 0 : index
    %c0_134 = arith.constant 0 : index
    %126 = vector.load %arg5[%c1_132, %c0_133, %c0_134] : memref<3x72x72xf32, #tpu.memory_space<vmem>>, vector<1x72x72xf32>
    %127 = vector.shape_cast %126 : vector<1x72x72xf32> to vector<72x72xf32>
    %cst_135 = arith.constant dense<0.000000e+00> : vector<16x72xf32>
    %128 = tpu.matmul %125, %127, %cst_135 {dimension_numbers = #tpu.dot_dimension_numbers<[1], [0], [0], [1], [0, 0, 1, 1], [], []>} : vector<16x72xf32>, vector<72x72xf32>, vector<16x72xf32> -> vector<16x72xf32>
    %129 = arith.addf %124, %128 : vector<16x72xf32>
    %c20_136 = arith.constant 20 : index
    %c0_137 = arith.constant 0 : index
    %130 = vector.load %arg25[%c20_136, %c0_137] : memref<36x72xf32, #tpu.memory_space<vmem>>, vector<16x72xf32>
    %c2_138 = arith.constant 2 : index
    %c0_139 = arith.constant 0 : index
    %c0_140 = arith.constant 0 : index
    %131 = vector.load %arg5[%c2_138, %c0_139, %c0_140] : memref<3x72x72xf32, #tpu.memory_space<vmem>>, vector<1x72x72xf32>
    %132 = vector.shape_cast %131 : vector<1x72x72xf32> to vector<72x72xf32>
    %cst_141 = arith.constant dense<0.000000e+00> : vector<16x72xf32>
    %133 = tpu.matmul %130, %132, %cst_141 {dimension_numbers = #tpu.dot_dimension_numbers<[1], [0], [0], [1], [0, 0, 1, 1], [], []>} : vector<16x72xf32>, vector<72x72xf32>, vector<16x72xf32> -> vector<16x72xf32>
    %134 = arith.addf %129, %133 : vector<16x72xf32>
    %c0_142 = arith.constant 0 : index
    %c0_143 = arith.constant 0 : index
    %135 = vector.load %arg6[%c0_142, %c0_143] : memref<1x72xf32, #tpu.memory_space<vmem>>, vector<1x72xf32>
    %136 = vector.broadcast %135 : vector<1x72xf32> to vector<16x72xf32>
    %137 = arith.mulf %134, %136 : vector<16x72xf32>
    %c0_144 = arith.constant 0 : index
    %c0_145 = arith.constant 0 : index
    %138 = vector.load %arg7[%c0_144, %c0_145] : memref<1x72xf32, #tpu.memory_space<vmem>>, vector<1x72xf32>
    %139 = vector.broadcast %138 : vector<1x72xf32> to vector<16x72xf32>
    %140 = arith.addf %137, %139 : vector<16x72xf32>
    %c19_146 = arith.constant 19 : index
    %c0_147 = arith.constant 0 : index
    %141 = vector.load %arg0[%c19_146, %c0_147] : memref<36x72xf32, #tpu.memory_space<vmem>>, vector<16x72xf32>
    %142 = arith.addf %140, %141 : vector<16x72xf32>
    %cst_148 = arith.constant 0.000000e+00 : f32
    %143 = vector.broadcast %cst_148 : f32 to vector<16x72xf32>
    %144 = arith.maximumf %142, %143 : vector<16x72xf32>
    %c10 = arith.constant 10 : index
    %c0_149 = arith.constant 0 : index
    %145 = vector.load %arg1[%c10, %c0_149] : memref<20x80xf32, #tpu.memory_space<vmem>>, vector<8x80xf32>
    %c0_150 = arith.constant 0 : index
    %c0_151 = arith.constant 0 : index
    %c0_152 = arith.constant 0 : index
    %146 = vector.load %arg8[%c0_150, %c0_151, %c0_152] : memref<3x80x80xf32, #tpu.memory_space<vmem>>, vector<1x80x80xf32>
    %147 = vector.shape_cast %146 : vector<1x80x80xf32> to vector<80x80xf32>
    %cst_153 = arith.constant dense<0.000000e+00> : vector<8x80xf32>
    %148 = tpu.matmul %145, %147, %cst_153 {dimension_numbers = #tpu.dot_dimension_numbers<[1], [0], [0], [1], [0, 0, 1, 1], [], []>} : vector<8x80xf32>, vector<80x80xf32>, vector<8x80xf32> -> vector<8x80xf32>
    %c11 = arith.constant 11 : index
    %c0_154 = arith.constant 0 : index
    %149 = vector.load %arg1[%c11, %c0_154] : memref<20x80xf32, #tpu.memory_space<vmem>>, vector<8x80xf32>
    %c1_155 = arith.constant 1 : index
    %c0_156 = arith.constant 0 : index
    %c0_157 = arith.constant 0 : index
    %150 = vector.load %arg8[%c1_155, %c0_156, %c0_157] : memref<3x80x80xf32, #tpu.memory_space<vmem>>, vector<1x80x80xf32>
    %151 = vector.shape_cast %150 : vector<1x80x80xf32> to vector<80x80xf32>
    %cst_158 = arith.constant dense<0.000000e+00> : vector<8x80xf32>
    %152 = tpu.matmul %149, %151, %cst_158 {dimension_numbers = #tpu.dot_dimension_numbers<[1], [0], [0], [1], [0, 0, 1, 1], [], []>} : vector<8x80xf32>, vector<80x80xf32>, vector<8x80xf32> -> vector<8x80xf32>
    %153 = arith.addf %148, %152 : vector<8x80xf32>
    %c12 = arith.constant 12 : index
    %c0_159 = arith.constant 0 : index
    %154 = vector.load %arg1[%c12, %c0_159] : memref<20x80xf32, #tpu.memory_space<vmem>>, vector<8x80xf32>
    %c2_160 = arith.constant 2 : index
    %c0_161 = arith.constant 0 : index
    %c0_162 = arith.constant 0 : index
    %155 = vector.load %arg8[%c2_160, %c0_161, %c0_162] : memref<3x80x80xf32, #tpu.memory_space<vmem>>, vector<1x80x80xf32>
    %156 = vector.shape_cast %155 : vector<1x80x80xf32> to vector<80x80xf32>
    %cst_163 = arith.constant dense<0.000000e+00> : vector<8x80xf32>
    %157 = tpu.matmul %154, %156, %cst_163 {dimension_numbers = #tpu.dot_dimension_numbers<[1], [0], [0], [1], [0, 0, 1, 1], [], []>} : vector<8x80xf32>, vector<80x80xf32>, vector<8x80xf32> -> vector<8x80xf32>
    %158 = arith.addf %153, %157 : vector<8x80xf32>
    %c0_164 = arith.constant 0 : index
    %c0_165 = arith.constant 0 : index
    %159 = vector.load %arg9[%c0_164, %c0_165] : memref<1x80xf32, #tpu.memory_space<vmem>>, vector<1x80xf32>
    %160 = vector.broadcast %159 : vector<1x80xf32> to vector<8x80xf32>
    %161 = arith.mulf %158, %160 : vector<8x80xf32>
    %c0_166 = arith.constant 0 : index
    %c0_167 = arith.constant 0 : index
    %162 = vector.load %arg10[%c0_166, %c0_167] : memref<1x80xf32, #tpu.memory_space<vmem>>, vector<1x80xf32>
    %163 = vector.broadcast %162 : vector<1x80xf32> to vector<8x80xf32>
    %164 = arith.addf %161, %163 : vector<8x80xf32>
    %cst_168 = arith.constant 0.000000e+00 : f32
    %165 = vector.broadcast %cst_168 : f32 to vector<8x80xf32>
    %166 = arith.maximumf %164, %165 : vector<8x80xf32>
    %c11_169 = arith.constant 11 : index
    %c0_170 = arith.constant 0 : index
    %167 = vector.load %arg26[%c11_169, %c0_170] : memref<20x80xf32, #tpu.memory_space<vmem>>, vector<8x80xf32>
    tpu.vector_store %arg26[%c11_169, %c0_170], %166 {strides = array<i32>} : memref<20x80xf32, #tpu.memory_space<vmem>>, vector<8x80xf32>,
    %c10_171 = arith.constant 10 : index
    %c0_172 = arith.constant 0 : index
    %168 = vector.load %arg26[%c10_171, %c0_172] : memref<20x80xf32, #tpu.memory_space<vmem>>, vector<8x80xf32>
    %c0_173 = arith.constant 0 : index
    %c0_174 = arith.constant 0 : index
    %c0_175 = arith.constant 0 : index
    %169 = vector.load %arg11[%c0_173, %c0_174, %c0_175] : memref<3x80x80xf32, #tpu.memory_space<vmem>>, vector<1x80x80xf32>
    %170 = vector.shape_cast %169 : vector<1x80x80xf32> to vector<80x80xf32>
    %cst_176 = arith.constant dense<0.000000e+00> : vector<8x80xf32>
    %171 = tpu.matmul %168, %170, %cst_176 {dimension_numbers = #tpu.dot_dimension_numbers<[1], [0], [0], [1], [0, 0, 1, 1], [], []>} : vector<8x80xf32>, vector<80x80xf32>, vector<8x80xf32> -> vector<8x80xf32>
    %c11_177 = arith.constant 11 : index
    %c0_178 = arith.constant 0 : index
    %172 = vector.load %arg26[%c11_177, %c0_178] : memref<20x80xf32, #tpu.memory_space<vmem>>, vector<8x80xf32>
    %c1_179 = arith.constant 1 : index
    %c0_180 = arith.constant 0 : index
    %c0_181 = arith.constant 0 : index
    %173 = vector.load %arg11[%c1_179, %c0_180, %c0_181] : memref<3x80x80xf32, #tpu.memory_space<vmem>>, vector<1x80x80xf32>
    %174 = vector.shape_cast %173 : vector<1x80x80xf32> to vector<80x80xf32>
    %cst_182 = arith.constant dense<0.000000e+00> : vector<8x80xf32>
    %175 = tpu.matmul %172, %174, %cst_182 {dimension_numbers = #tpu.dot_dimension_numbers<[1], [0], [0], [1], [0, 0, 1, 1], [], []>} : vector<8x80xf32>, vector<80x80xf32>, vector<8x80xf32> -> vector<8x80xf32>
    %176 = arith.addf %171, %175 : vector<8x80xf32>
    %c12_183 = arith.constant 12 : index
    %c0_184 = arith.constant 0 : index
    %177 = vector.load %arg26[%c12_183, %c0_184] : memref<20x80xf32, #tpu.memory_space<vmem>>, vector<8x80xf32>
    %c2_185 = arith.constant 2 : index
    %c0_186 = arith.constant 0 : index
    %c0_187 = arith.constant 0 : index
    %178 = vector.load %arg11[%c2_185, %c0_186, %c0_187] : memref<3x80x80xf32, #tpu.memory_space<vmem>>, vector<1x80x80xf32>
    %179 = vector.shape_cast %178 : vector<1x80x80xf32> to vector<80x80xf32>
    %cst_188 = arith.constant dense<0.000000e+00> : vector<8x80xf32>
    %180 = tpu.matmul %177, %179, %cst_188 {dimension_numbers = #tpu.dot_dimension_numbers<[1], [0], [0], [1], [0, 0, 1, 1], [], []>} : vector<8x80xf32>, vector<80x80xf32>, vector<8x80xf32> -> vector<8x80xf32>
    %181 = arith.addf %176, %180 : vector<8x80xf32>
    %c0_189 = arith.constant 0 : index
    %c0_190 = arith.constant 0 : index
    %182 = vector.load %arg12[%c0_189, %c0_190] : memref<1x80xf32, #tpu.memory_space<vmem>>, vector<1x80xf32>
    %183 = vector.broadcast %182 : vector<1x80xf32> to vector<8x80xf32>
    %184 = arith.mulf %181, %183 : vector<8x80xf32>
    %c0_191 = arith.constant 0 : index
    %c0_192 = arith.constant 0 : index
    %185 = vector.load %arg13[%c0_191, %c0_192] : memref<1x80xf32, #tpu.memory_space<vmem>>, vector<1x80xf32>
    %186 = vector.broadcast %185 : vector<1x80xf32> to vector<8x80xf32>
    %187 = arith.addf %184, %186 : vector<8x80xf32>
    %c11_193 = arith.constant 11 : index
    %c0_194 = arith.constant 0 : index
    %188 = vector.load %arg1[%c11_193, %c0_194] : memref<20x80xf32, #tpu.memory_space<vmem>>, vector<8x80xf32>
    %189 = arith.addf %187, %188 : vector<8x80xf32>
    %cst_195 = arith.constant 0.000000e+00 : f32
    %190 = vector.broadcast %cst_195 : f32 to vector<8x80xf32>
    %191 = arith.maximumf %189, %190 : vector<8x80xf32>
    %192 = vector.extract_strided_slice %97 {offsets = [0, 8], sizes = [8, 64], strides = [1, 1]} : vector<8x80xf32> to vector<8x64xf32>
    %c0_196 = arith.constant 0 : index
    %c0_197 = arith.constant 0 : index
    %193 = vector.load %arg14[%c0_196, %c0_197] : memref<64x32xf32, #tpu.memory_space<vmem>>, vector<64x32xf32>
    %cst_198 = arith.constant dense<0.000000e+00> : vector<8x32xf32>
    %194 = tpu.matmul %192, %193, %cst_198 {dimension_numbers = #tpu.dot_dimension_numbers<[1], [0], [0], [1], [0, 0, 1, 1], [], []>} : vector<8x64xf32>, vector<64x32xf32>, vector<8x32xf32> -> vector<8x32xf32>
    %c0_199 = arith.constant 0 : index
    %c0_200 = arith.constant 0 : index
    %195 = vector.load %arg15[%c0_199, %c0_200] : memref<1x32xf32, #tpu.memory_space<vmem>>, vector<1x32xf32>
    %196 = vector.broadcast %195 : vector<1x32xf32> to vector<8x32xf32>
    %197 = arith.mulf %194, %196 : vector<8x32xf32>
    %c0_201 = arith.constant 0 : index
    %c0_202 = arith.constant 0 : index
    %198 = vector.load %arg16[%c0_201, %c0_202] : memref<1x32xf32, #tpu.memory_space<vmem>>, vector<1x32xf32>
    %199 = vector.broadcast %198 : vector<1x32xf32> to vector<8x32xf32>
    %200 = arith.addf %197, %199 : vector<8x32xf32>
    %c0_203 = arith.constant 0 : index
    %c0_204 = arith.constant 0 : index
    %201 = vector.load %arg17[%c0_203, %c0_204] : memref<16x8xf32, #tpu.memory_space<vmem>>, vector<16x8xf32>
    %cst_205 = arith.constant dense<0.000000e+00> : vector<16x32xf32>
    %202 = tpu.matmul %201, %200, %cst_205 {dimension_numbers = #tpu.dot_dimension_numbers<[1], [0], [0], [1], [0, 0, 1, 1], [], []>} : vector<16x8xf32>, vector<8x32xf32>, vector<16x32xf32> -> vector<16x32xf32>
    %c0_206 = arith.constant 0 : index
    %c0_207 = arith.constant 0 : index
    %203 = vector.load %arg18[%c0_206, %c0_207] : memref<32x64xf32, #tpu.memory_space<vmem>>, vector<32x64xf32>
    %cst_208 = arith.constant dense<0.000000e+00> : vector<16x64xf32>
    %204 = tpu.matmul %202, %203, %cst_208 {dimension_numbers = #tpu.dot_dimension_numbers<[1], [0], [0], [1], [0, 0, 1, 1], [], []>} : vector<16x32xf32>, vector<32x64xf32>, vector<16x64xf32> -> vector<16x64xf32>
    %205 = vector.extract_strided_slice %50 {offsets = [0, 4], sizes = [16, 64], strides = [1, 1]} : vector<16x72xf32> to vector<16x64xf32>
    %206 = arith.addf %205, %204 : vector<16x64xf32>
    %cst_209 = arith.constant 0.000000e+00 : f32
    %207 = vector.broadcast %cst_209 : f32 to vector<16x64xf32>
    %208 = arith.maximumf %206, %207 : vector<16x64xf32>
    %c0_210 = arith.constant 0 : index
    %c0_211 = arith.constant 0 : index
    %209 = vector.load %arg23[%c0_210, %c0_211] : memref<16x128xf32, #tpu.memory_space<vmem>>, vector<16x64xf32>
    tpu.vector_store %arg23[%c0_210, %c0_211], %208 {strides = array<i32>} : memref<16x128xf32, #tpu.memory_space<vmem>>, vector<16x64xf32>,
    %c0_212 = arith.constant 0 : index
    %c0_213 = arith.constant 0 : index
    %c0_214 = arith.constant 0 : index
    %210 = vector.load %arg19[%c0_212, %c0_213, %c0_214] : memref<3x8x16xf32, #tpu.memory_space<vmem>>, vector<1x8x16xf32>
    %211 = vector.shape_cast %210 : vector<1x8x16xf32> to vector<8x16xf32>
    %cst_215 = arith.constant dense<0.000000e+00> : vector<8x72xf32>
    %212 = tpu.matmul %211, %50, %cst_215 {dimension_numbers = #tpu.dot_dimension_numbers<[1], [0], [0], [1], [0, 0, 1, 1], [], []>} : vector<8x16xf32>, vector<16x72xf32>, vector<8x72xf32> -> vector<8x72xf32>
    %c0_216 = arith.constant 0 : index
    %c0_217 = arith.constant 0 : index
    %c0_218 = arith.constant 0 : index
    %213 = vector.load %arg20[%c0_216, %c0_217, %c0_218] : memref<3x72x64xf32, #tpu.memory_space<vmem>>, vector<1x72x64xf32>
    %214 = vector.shape_cast %213 : vector<1x72x64xf32> to vector<72x64xf32>
    %cst_219 = arith.constant dense<0.000000e+00> : vector<8x64xf32>
    %215 = tpu.matmul %212, %214, %cst_219 {dimension_numbers = #tpu.dot_dimension_numbers<[1], [0], [0], [1], [0, 0, 1, 1], [], []>} : vector<8x72xf32>, vector<72x64xf32>, vector<8x64xf32> -> vector<8x64xf32>
    %c1_220 = arith.constant 1 : index
    %c0_221 = arith.constant 0 : index
    %c0_222 = arith.constant 0 : index
    %216 = vector.load %arg19[%c1_220, %c0_221, %c0_222] : memref<3x8x16xf32, #tpu.memory_space<vmem>>, vector<1x8x16xf32>
    %217 = vector.shape_cast %216 : vector<1x8x16xf32> to vector<8x16xf32>
    %cst_223 = arith.constant dense<0.000000e+00> : vector<8x72xf32>
    %218 = tpu.matmul %217, %50, %cst_223 {dimension_numbers = #tpu.dot_dimension_numbers<[1], [0], [0], [1], [0, 0, 1, 1], [], []>} : vector<8x16xf32>, vector<16x72xf32>, vector<8x72xf32> -> vector<8x72xf32>
    %c1_224 = arith.constant 1 : index
    %c0_225 = arith.constant 0 : index
    %c0_226 = arith.constant 0 : index
    %219 = vector.load %arg20[%c1_224, %c0_225, %c0_226] : memref<3x72x64xf32, #tpu.memory_space<vmem>>, vector<1x72x64xf32>
    %220 = vector.shape_cast %219 : vector<1x72x64xf32> to vector<72x64xf32>
    %cst_227 = arith.constant dense<0.000000e+00> : vector<8x64xf32>
    %221 = tpu.matmul %218, %220, %cst_227 {dimension_numbers = #tpu.dot_dimension_numbers<[1], [0], [0], [1], [0, 0, 1, 1], [], []>} : vector<8x72xf32>, vector<72x64xf32>, vector<8x64xf32> -> vector<8x64xf32>
    %222 = arith.addf %215, %221 : vector<8x64xf32>
    %c2_228 = arith.constant 2 : index
    %c0_229 = arith.constant 0 : index
    %c0_230 = arith.constant 0 : index
    %223 = vector.load %arg19[%c2_228, %c0_229, %c0_230] : memref<3x8x16xf32, #tpu.memory_space<vmem>>, vector<1x8x16xf32>
    %224 = vector.shape_cast %223 : vector<1x8x16xf32> to vector<8x16xf32>
    %cst_231 = arith.constant dense<0.000000e+00> : vector<8x72xf32>
    %225 = tpu.matmul %224, %50, %cst_231 {dimension_numbers = #tpu.dot_dimension_numbers<[1], [0], [0], [1], [0, 0, 1, 1], [], []>} : vector<8x16xf32>, vector<16x72xf32>, vector<8x72xf32> -> vector<8x72xf32>
    %c2_232 = arith.constant 2 : index
    %c0_233 = arith.constant 0 : index
    %c0_234 = arith.constant 0 : index
    %226 = vector.load %arg20[%c2_232, %c0_233, %c0_234] : memref<3x72x64xf32, #tpu.memory_space<vmem>>, vector<1x72x64xf32>
    %227 = vector.shape_cast %226 : vector<1x72x64xf32> to vector<72x64xf32>
    %cst_235 = arith.constant dense<0.000000e+00> : vector<8x64xf32>
    %228 = tpu.matmul %225, %227, %cst_235 {dimension_numbers = #tpu.dot_dimension_numbers<[1], [0], [0], [1], [0, 0, 1, 1], [], []>} : vector<8x72xf32>, vector<72x64xf32>, vector<8x64xf32> -> vector<8x64xf32>
    %229 = arith.addf %222, %228 : vector<8x64xf32>
    %c0_236 = arith.constant 0 : index
    %c0_237 = arith.constant 0 : index
    %230 = vector.load %arg21[%c0_236, %c0_237] : memref<1x64xf32, #tpu.memory_space<vmem>>, vector<1x64xf32>
    %231 = vector.broadcast %230 : vector<1x64xf32> to vector<8x64xf32>
    %232 = arith.mulf %229, %231 : vector<8x64xf32>
    %c0_238 = arith.constant 0 : index
    %c0_239 = arith.constant 0 : index
    %233 = vector.load %arg22[%c0_238, %c0_239] : memref<1x64xf32, #tpu.memory_space<vmem>>, vector<1x64xf32>
    %234 = vector.broadcast %233 : vector<1x64xf32> to vector<8x64xf32>
    %235 = arith.addf %232, %234 : vector<8x64xf32>
    %236 = vector.extract_strided_slice %97 {offsets = [0, 8], sizes = [8, 64], strides = [1, 1]} : vector<8x80xf32> to vector<8x64xf32>
    %237 = arith.addf %235, %236 : vector<8x64xf32>
    %cst_240 = arith.constant 0.000000e+00 : f32
    %238 = vector.broadcast %cst_240 : f32 to vector<8x64xf32>
    %239 = arith.maximumf %237, %238 : vector<8x64xf32>
    %c0_241 = arith.constant 0 : index
    %c0_242 = arith.constant 0 : index
    %240 = vector.load %arg24[%c0_241, %c0_242] : memref<8x128xf32, #tpu.memory_space<vmem>>, vector<8x64xf32>
    tpu.vector_store %arg24[%c0_241, %c0_242], %239 {strides = array<i32>} : memref<8x128xf32, #tpu.memory_space<vmem>>, vector<8x64xf32>,
    %241 = vector.extract_strided_slice %191 {offsets = [0, 8], sizes = [8, 64], strides = [1, 1]} : vector<8x80xf32> to vector<8x64xf32>
    %c0_243 = arith.constant 0 : index
    %c0_244 = arith.constant 0 : index
    %242 = vector.load %arg14[%c0_243, %c0_244] : memref<64x32xf32, #tpu.memory_space<vmem>>, vector<64x32xf32>
    %cst_245 = arith.constant dense<0.000000e+00> : vector<8x32xf32>
    %243 = tpu.matmul %241, %242, %cst_245 {dimension_numbers = #tpu.dot_dimension_numbers<[1], [0], [0], [1], [0, 0, 1, 1], [], []>} : vector<8x64xf32>, vector<64x32xf32>, vector<8x32xf32> -> vector<8x32xf32>
    %c0_246 = arith.constant 0 : index
    %c0_247 = arith.constant 0 : index
    %244 = vector.load %arg15[%c0_246, %c0_247] : memref<1x32xf32, #tpu.memory_space<vmem>>, vector<1x32xf32>
    %245 = vector.broadcast %244 : vector<1x32xf32> to vector<8x32xf32>
    %246 = arith.mulf %243, %245 : vector<8x32xf32>
    %c0_248 = arith.constant 0 : index
    %c0_249 = arith.constant 0 : index
    %247 = vector.load %arg16[%c0_248, %c0_249] : memref<1x32xf32, #tpu.memory_space<vmem>>, vector<1x32xf32>
    %248 = vector.broadcast %247 : vector<1x32xf32> to vector<8x32xf32>
    %249 = arith.addf %246, %248 : vector<8x32xf32>
    %c0_250 = arith.constant 0 : index
    %c0_251 = arith.constant 0 : index
    %250 = vector.load %arg17[%c0_250, %c0_251] : memref<16x8xf32, #tpu.memory_space<vmem>>, vector<16x8xf32>
    %cst_252 = arith.constant dense<0.000000e+00> : vector<16x32xf32>
    %251 = tpu.matmul %250, %249, %cst_252 {dimension_numbers = #tpu.dot_dimension_numbers<[1], [0], [0], [1], [0, 0, 1, 1], [], []>} : vector<16x8xf32>, vector<8x32xf32>, vector<16x32xf32> -> vector<16x32xf32>
    %c0_253 = arith.constant 0 : index
    %c0_254 = arith.constant 0 : index
    %252 = vector.load %arg18[%c0_253, %c0_254] : memref<32x64xf32, #tpu.memory_space<vmem>>, vector<32x64xf32>
    %cst_255 = arith.constant dense<0.000000e+00> : vector<16x64xf32>
    %253 = tpu.matmul %251, %252, %cst_255 {dimension_numbers = #tpu.dot_dimension_numbers<[1], [0], [0], [1], [0, 0, 1, 1], [], []>} : vector<16x32xf32>, vector<32x64xf32>, vector<16x64xf32> -> vector<16x64xf32>
    %254 = vector.extract_strided_slice %144 {offsets = [0, 4], sizes = [16, 64], strides = [1, 1]} : vector<16x72xf32> to vector<16x64xf32>
    %255 = arith.addf %254, %253 : vector<16x64xf32>
    %cst_256 = arith.constant 0.000000e+00 : f32
    %256 = vector.broadcast %cst_256 : f32 to vector<16x64xf32>
    %257 = arith.maximumf %255, %256 : vector<16x64xf32>
    %c0_257 = arith.constant 0 : index
    %c64 = arith.constant 64 : index
    %258 = vector.load %arg23[%c0_257, %c64] : memref<16x128xf32, #tpu.memory_space<vmem>>, vector<16x64xf32>
    tpu.vector_store %arg23[%c0_257, %c64], %257 {strides = array<i32>} : memref<16x128xf32, #tpu.memory_space<vmem>>, vector<16x64xf32>,
    %c0_258 = arith.constant 0 : index
    %c0_259 = arith.constant 0 : index
    %c0_260 = arith.constant 0 : index
    %259 = vector.load %arg19[%c0_258, %c0_259, %c0_260] : memref<3x8x16xf32, #tpu.memory_space<vmem>>, vector<1x8x16xf32>
    %260 = vector.shape_cast %259 : vector<1x8x16xf32> to vector<8x16xf32>
    %cst_261 = arith.constant dense<0.000000e+00> : vector<8x72xf32>
    %261 = tpu.matmul %260, %144, %cst_261 {dimension_numbers = #tpu.dot_dimension_numbers<[1], [0], [0], [1], [0, 0, 1, 1], [], []>} : vector<8x16xf32>, vector<16x72xf32>, vector<8x72xf32> -> vector<8x72xf32>
    %c0_262 = arith.constant 0 : index
    %c0_263 = arith.constant 0 : index
    %c0_264 = arith.constant 0 : index
    %262 = vector.load %arg20[%c0_262, %c0_263, %c0_264] : memref<3x72x64xf32, #tpu.memory_space<vmem>>, vector<1x72x64xf32>
    %263 = vector.shape_cast %262 : vector<1x72x64xf32> to vector<72x64xf32>
    %cst_265 = arith.constant dense<0.000000e+00> : vector<8x64xf32>
    %264 = tpu.matmul %261, %263, %cst_265 {dimension_numbers = #tpu.dot_dimension_numbers<[1], [0], [0], [1], [0, 0, 1, 1], [], []>} : vector<8x72xf32>, vector<72x64xf32>, vector<8x64xf32> -> vector<8x64xf32>
    %c1_266 = arith.constant 1 : index
    %c0_267 = arith.constant 0 : index
    %c0_268 = arith.constant 0 : index
    %265 = vector.load %arg19[%c1_266, %c0_267, %c0_268] : memref<3x8x16xf32, #tpu.memory_space<vmem>>, vector<1x8x16xf32>
    %266 = vector.shape_cast %265 : vector<1x8x16xf32> to vector<8x16xf32>
    %cst_269 = arith.constant dense<0.000000e+00> : vector<8x72xf32>
    %267 = tpu.matmul %266, %144, %cst_269 {dimension_numbers = #tpu.dot_dimension_numbers<[1], [0], [0], [1], [0, 0, 1, 1], [], []>} : vector<8x16xf32>, vector<16x72xf32>, vector<8x72xf32> -> vector<8x72xf32>
    %c1_270 = arith.constant 1 : index
    %c0_271 = arith.constant 0 : index
    %c0_272 = arith.constant 0 : index
    %268 = vector.load %arg20[%c1_270, %c0_271, %c0_272] : memref<3x72x64xf32, #tpu.memory_space<vmem>>, vector<1x72x64xf32>
    %269 = vector.shape_cast %268 : vector<1x72x64xf32> to vector<72x64xf32>
    %cst_273 = arith.constant dense<0.000000e+00> : vector<8x64xf32>
    %270 = tpu.matmul %267, %269, %cst_273 {dimension_numbers = #tpu.dot_dimension_numbers<[1], [0], [0], [1], [0, 0, 1, 1], [], []>} : vector<8x72xf32>, vector<72x64xf32>, vector<8x64xf32> -> vector<8x64xf32>
    %271 = arith.addf %264, %270 : vector<8x64xf32>
    %c2_274 = arith.constant 2 : index
    %c0_275 = arith.constant 0 : index
    %c0_276 = arith.constant 0 : index
    %272 = vector.load %arg19[%c2_274, %c0_275, %c0_276] : memref<3x8x16xf32, #tpu.memory_space<vmem>>, vector<1x8x16xf32>
    %273 = vector.shape_cast %272 : vector<1x8x16xf32> to vector<8x16xf32>
    %cst_277 = arith.constant dense<0.000000e+00> : vector<8x72xf32>
    %274 = tpu.matmul %273, %144, %cst_277 {dimension_numbers = #tpu.dot_dimension_numbers<[1], [0], [0], [1], [0, 0, 1, 1], [], []>} : vector<8x16xf32>, vector<16x72xf32>, vector<8x72xf32> -> vector<8x72xf32>
    %c2_278 = arith.constant 2 : index
    %c0_279 = arith.constant 0 : index
    %c0_280 = arith.constant 0 : index
    %275 = vector.load %arg20[%c2_278, %c0_279, %c0_280] : memref<3x72x64xf32, #tpu.memory_space<vmem>>, vector<1x72x64xf32>
    %276 = vector.shape_cast %275 : vector<1x72x64xf32> to vector<72x64xf32>
    %cst_281 = arith.constant dense<0.000000e+00> : vector<8x64xf32>
    %277 = tpu.matmul %274, %276, %cst_281 {dimension_numbers = #tpu.dot_dimension_numbers<[1], [0], [0], [1], [0, 0, 1, 1], [], []>} : vector<8x72xf32>, vector<72x64xf32>, vector<8x64xf32> -> vector<8x64xf32>
    %278 = arith.addf %271, %277 : vector<8x64xf32>
    %c0_282 = arith.constant 0 : index
    %c0_283 = arith.constant 0 : index
    %279 = vector.load %arg21[%c0_282, %c0_283] : memref<1x64xf32, #tpu.memory_space<vmem>>, vector<1x64xf32>
    %280 = vector.broadcast %279 : vector<1x64xf32> to vector<8x64xf32>
    %281 = arith.mulf %278, %280 : vector<8x64xf32>
    %c0_284 = arith.constant 0 : index
    %c0_285 = arith.constant 0 : index
    %282 = vector.load %arg22[%c0_284, %c0_285] : memref<1x64xf32, #tpu.memory_space<vmem>>, vector<1x64xf32>
    %283 = vector.broadcast %282 : vector<1x64xf32> to vector<8x64xf32>
    %284 = arith.addf %281, %283 : vector<8x64xf32>
    %285 = vector.extract_strided_slice %191 {offsets = [0, 8], sizes = [8, 64], strides = [1, 1]} : vector<8x80xf32> to vector<8x64xf32>
    %286 = arith.addf %284, %285 : vector<8x64xf32>
    %cst_286 = arith.constant 0.000000e+00 : f32
    %287 = vector.broadcast %cst_286 : f32 to vector<8x64xf32>
    %288 = arith.maximumf %286, %287 : vector<8x64xf32>
    %c0_287 = arith.constant 0 : index
    %c64_288 = arith.constant 64 : index
    %289 = vector.load %arg24[%c0_287, %c64_288] : memref<8x128xf32, #tpu.memory_space<vmem>>, vector<8x64xf32>
    tpu.vector_store %arg24[%c0_287, %c64_288], %288 {strides = array<i32>} : memref<8x128xf32, #tpu.memory_space<vmem>>, vector<8x64xf32>,
    return
  }
}

</mosaic_0001>

<bundles_post_ra>
// kernel: hr_module_forward.1
= control target key start
LH: loop header
LB: loop body
LE: loop exit
PB: predicated region body
PF: predicated region fallthrough
CT: control target
= control target key end

     0   :  { %vm76_vm0 = vcmask 588800   ;;  %v3515_v35 = vmov 0.0   ;;  %vm83_vm1 = vcmask 654336   ;;  %vm81_vm2 = vcmask 584704   ;;  %s3481_s2 = inlined_call_operand.vmem [shape: f32[3,72,72], index: 2, kind: input, shape index: {}]   ;;  %s3482_s5 = inlined_call_operand.vmem [shape: f32[3,72,72], index: 5, kind: input, shape index: {}]   ;;  %s3483_s0 = inlined_call_operand.vmem [shape: f32[36,72], index: 0, kind: input, shape index: {}]   ;;  %s3484_s3 = inlined_call_operand.vmem [shape: f32[1,72], index: 3, kind: input, shape index: {}]   ;;  %s3485_s4 = inlined_call_operand.vmem [shape: f32[1,72], index: 4, kind: input, shape index: {}]   ;;  %s3486_s8 = inlined_call_operand.vmem [shape: f32[3,80,80], index: 8, kind: input, shape index: {}]   ;;  %s3487_s1 = inlined_call_operand.vmem [shape: f32[20,80], index: 1, kind: input, shape index: {}]   ;;  %s3488_s6 = inlined_call_operand.vmem [shape: f32[1,72], index: 6, kind: input, shape index: {}]   ;;  %s3489_s7 = inlined_call_operand.vmem [shape: f32[1,72], index: 7, kind: input, shape index: {}]   ;;  %s3490_s9 = inlined_call_operand.vmem [shape: f32[1,80], index: 9, kind: input, shape index: {}]   ;;  %s3491_s10 = inlined_call_operand.vmem [shape: f32[1,80], index: 10, kind: input, shape index: {}]   ;;  %s3492_s11 = inlined_call_operand.vmem [shape: f32[3,80,80], index: 11, kind: input, shape index: {}]   ;;  %s3493_s12 = inlined_call_operand.vmem [shape: f32[1,80], index: 12, kind: input, shape index: {}]   ;;  %s3494_s13 = inlined_call_operand.vmem [shape: f32[1,80], index: 13, kind: input, shape index: {}]   ;;  %s3495_s14 = inlined_call_operand.vmem [shape: f32[64,32], index: 14, kind: input, shape index: {}]   ;;  %s3496_s15 = inlined_call_operand.vmem [shape: f32[1,32], index: 15, kind: input, shape index: {}]   ;;  %s3497_s16 = inlined_call_operand.vmem [shape: f32[1,32], index: 16, kind: input, shape index: {}]   ;;  %s3498_s19 = inlined_call_operand.vmem [shape: f32[3,8,16], index: 19, kind: input, shape index: {}]   ;;  %s3499_s20 = inlined_call_operand.vmem [shape: f32[3,72,64], index: 20, kind: input, shape index: {}]   ;;  %s3500_s17 = inlined_call_operand.vmem [shape: f32[16,8], index: 17, kind: input, shape index: {}]   ;;  %s3501_s18 = inlined_call_operand.vmem [shape: f32[32,64], index: 18, kind: input, shape index: {}]   ;;  %s3502_s21 = inlined_call_operand.vmem [shape: f32[1,64], index: 21, kind: input, shape index: {}]   ;;  %s3503_s22 = inlined_call_operand.vmem [shape: f32[1,64], index: 22, kind: input, shape index: {}]   ;;  %s3504_s24 = inlined_call_operand.vmem [shape: f32[8,128], index: 24, kind: output, shape index: {1}]   ;;  %s3505_s23 = inlined_call_operand.vmem [shape: f32[16,128], index: 23, kind: output, shape index: {0}]  }
   0x1   :  { %3554 = sst [smem:[#allocation40_spill]] %s3481_s2  ;;  %77 = vst.msk [vmem:[#allocation2] sm:$0xff] %vm76_vm0, %v3515_v35  ;;  %vm1125_vm3 = vcmask 523264   ;;  %vm86_vm4 = vcmask 650240   ;;  %vm1247_vm5 = vcmask 130048   ;;  %vm1160_vm6 = vcmask 64512  }
   0x2   :  { %3555 = sst [smem:[#allocation41_spill]] %s3482_s5  ;;  %78 = vst.msk [vmem:[#allocation2 + $0x8] sm:$0xff] %vm76_vm0, %v3515_v35  ;;  %vm1194_vm7 = vcmask 261120   ;;  %vm1561_vm8 = vcmask 1048064  }
   0x3   :  { %3556 = sst [smem:[#allocation42_spill]] %s3483_s0  ;;  %79 = vst.msk [vmem:[#allocation2 + $0x10] sm:$0xff] %vm76_vm0, %v3515_v35 }
   0x4   :  { %3557 = sst [smem:[#allocation43_spill]] %s3484_s3  ;;  %80 = vst.msk [vmem:[#allocation2 + $0x18] sm:$0xff] %vm76_vm0, %v3515_v35 }
   0x5   :  { %3558 = sst [smem:[#allocation44_spill]] %s3485_s4 }
   0x6   :  { %3559 = sst [smem:[#allocation45_spill]] %s3486_s8 }
   0x7   :  { %3560 = sst [smem:[#allocation46_spill]] %s3487_s1  ;;  %s2042_s1 = smov 124  }
   0x8   :  { %3561 = sst [smem:[#allocation47_spill]] %s3488_s6 }
   0x9   :  { %3562 = sst [smem:[#allocation48_spill]] %s3489_s7 }
   0xa   :  { %s3563_s27 = sld [smem:[#allocation40_spill]] }
   0xb   :  { %s3564_s28 = sld [smem:[#allocation41_spill]] }
   0xc   :  { %s3565_s26 = sld [smem:[#allocation42_spill]] }
   0xd   :  { %s3572_s29 = sld [smem:[#allocation45_spill]] }
   0xe   :  { %s3599_s2 = sld [smem:[#allocation43_spill]] }
   0xf   :  { %s3601_s3 = sld [smem:[#allocation44_spill]] }
  0x10   :  { %v2173_v0 = vld [vmem:[%s3563_s27 + $0xd0] sm:$0xff]  ;;  %v2178_v1 = vld [vmem:[%s3563_s27 + $0xc8] sm:$0xff]  ;;  %v2190_v3 = vld [vmem:[%s3563_s27 + $0x40] sm:$0xff]  ;;  %s3602_s4 = sld [smem:[#allocation46_spill]] }
  0x11   :  { %v2183_v2 = vld [vmem:[%s3563_s27 + $0x88] sm:$0xff]  ;;  %194 = vmatpush.msra.mxu2 %v2173_v0  ;;  %v2195_v4 = vld [vmem:[%s3563_s27 + $0x80] sm:$0xff]  ;;  %153 = vmatpush.msra.mxu1 %v2190_v3  ;;  %v2206_v6 = vld [vmem:[%s3563_s27 + $0x38] sm:$0xff]  ;;  %s3641_s8 = sld [smem:[#allocation47_spill]] }
  0x12   :  { %124 = vmatpush.msra.mxu0 %v2183_v2  ;;  %v2201_v5 = vld [vmem:[%s3563_s27 + $0xc0] sm:$0xff]  ;;  %v2211_v7 = vld [vmem:[%s3563_s27 + $0x78] sm:$0xff]  ;;  %v2218_v8 = vld [vmem:[%s3563_s27 + $0x30] sm:$0xff]  ;;  %s3642_s30 = sld [smem:[#allocation48_spill]] }
  0x13   :  { %195 = vmatpush.msra.mxu2 %v2178_v1  ;;  %154 = vmatpush.msra.mxu1 %v2206_v6  ;;  %v2224_v9 = vld [vmem:[%s3563_s27 + $0xb8] sm:$0xff]  ;;  %v2229_v10 = vld [vmem:[%s3563_s27 + $0x70] sm:$0xff]  ;;  %v2236_v11 = vld [vmem:[%s3563_s27 + $0x28] sm:$0xff] }
  0x14   :  { %125 = vmatpush.msra.mxu0 %v2195_v4  ;;  %v2242_v12 = vld [vmem:[%s3563_s27 + $0xb0] sm:$0xff]  ;;  %v2247_v13 = vld [vmem:[%s3563_s27 + $0x68] sm:$0xff]  ;;  %v2254_v14 = vld [vmem:[%s3563_s27 + $0x20] sm:$0xff] }
  0x15   :  { %196 = vmatpush.msra.mxu2 %v2201_v5  ;;  %155 = vmatpush.msra.mxu1 %v2218_v8  ;;  %v2260_v15 = vld [vmem:[%s3563_s27 + $0xa8] sm:$0xff]  ;;  %v2265_v16 = vld [vmem:[%s3563_s27 + $0x60] sm:$0xff]  ;;  %v2272_v17 = vld [vmem:[%s3563_s27 + $0x18] sm:$0xff] }
  0x16   :  { %126 = vmatpush.msra.mxu0 %v2211_v7  ;;  %v2278_v18 = vld [vmem:[%s3563_s27 + $0xa0] sm:$0xff]  ;;  %v2283_v19 = vld [vmem:[%s3563_s27 + $0x58] sm:$0xff]  ;;  %v2290_v20 = vld [vmem:[%s3563_s27 + $0x10] sm:$0xff] }
  0x17   :  { %197 = vmatpush.msra.mxu2 %v2224_v9  ;;  %156 = vmatpush.msra.mxu1 %v2236_v11  ;;  %v2295_v21 = vld [vmem:[%s3564_s28 + $0x88] sm:$0xff]  ;;  %v2301_v22 = vld [vmem:[%s3563_s27 + $0x98] sm:$0xff]  ;;  %v2306_v23 = vld [vmem:[%s3563_s27 + $0x50] sm:$0xff] }
  0x18   :  { %127 = vmatpush.msra.mxu0 %v2229_v10  ;;  %264 = vmatpush.msra.mxu3 %v2295_v21  ;;  %v2314_v24 = vld [vmem:[%s3563_s27 + $0x8] sm:$0xff]  ;;  %v2320_v25 = vld [vmem:[%s3563_s27 + $0x90] sm:$0xff]  ;;  %v2335_v28 = vld [vmem:[%s3563_s27] sm:$0xff] }
  0x19   :  { %198 = vmatpush.msra.mxu2 %v2242_v12  ;;  %157 = vmatpush.msra.mxu1 %v2254_v14  ;;  %v2325_v26 = vld [vmem:[%s3563_s27 + $0x48] sm:$0xff]  ;;  %v88_v30 = vld [vmem:[%s3565_s26] sm:$0xff]  ;;  %v2391_v37 = vld [vmem:[%s3564_s28 + $0x78] sm:$0xff] }
  0x1a   :  { %128 = vmatpush.msra.mxu0 %v2247_v13  ;;  %v169_v27 = vld [vmem:[%s3565_s26 + $0x2] sm:$0xff]  ;;  %v170_v31 = vld [vmem:[%s3565_s26 + $0xa] sm:$0xff]  ;;  %v2397_v38 = vld [vmem:[%s3564_s28 + $0x38] sm:$0xff] }
  0x1b   :  { %199 = vmatpush.msra.mxu2 %v2260_v15  ;;  %158 = vmatpush.msra.mxu1 %v2272_v17  ;;  %v2341_v29 = vld [vmem:[%s3565_s26 + $0x1] sm:$0xff]  ;;  %v2359_v32 = vld [vmem:[%s3565_s26 + $0x9] sm:$0xff]  ;;  %v2445_v46 = vld [vmem:[%s3564_s28 + $0x58] sm:$0xff] }
  0x1c   :  { %129 = vmatpush.msra.mxu0 %v2265_v16  ;;  %3566 = vst [vmem:[#allocation4_spill] sm:$0xff] %v2341_v29  ;;  %v89_v33 = vld [vmem:[%s3565_s26 + $0x8] sm:$0xff]  ;;  %v2371_v34 = vld [vmem:[%s3564_s28 + $0x80] sm:$0xff]  ;;  %v2403_v39 = vld [vmem:[%s3564_s28 + $0x70] sm:$0xff] }
  0x1d   :  { %200 = vmatpush.msra.mxu2 %v2278_v18  ;;  %159 = vmatpush.msra.mxu1 %v2290_v20  ;;  %3567 = vst [vmem:[#allocation5_spill] sm:$0xff] %v2359_v32  ;;  %v2383_v36 = vld [vmem:[%s3564_s28 + $0x40] sm:$0xff]  ;;  %v2409_v40 = vld [vmem:[%s3564_s28 + $0x30] sm:$0xff]  ;;  %v2415_v41 = vld [vmem:[%s3564_s28 + $0x68] sm:$0xff] }
  0x1e   :  { %130 = vmatpush.msra.mxu0 %v2283_v19  ;;  %265 = vmatpush.msra.mxu3 %v2371_v34  ;;  %v2421_v42 = vld [vmem:[%s3564_s28 + $0x28] sm:$0xff]  ;;  %v2427_v43 = vld [vmem:[%s3564_s28 + $0x60] sm:$0xff]  ;;  %v2438_v45 = vld [vmem:[%s3564_s28 + $0xd0] sm:$0xff] }
  0x1f   :  { %201 = vmatpush.msra.mxu2 %v2301_v22  ;;  %160 = vmatpush.msra.mxu1 %v2314_v24  ;;  %v2433_v44 = vld [vmem:[%s3564_s28 + $0x20] sm:$0xff]  ;;  %3568 = vst [vmem:[#allocation6_spill] sm:$0xff] %v2438_v45  ;;  %v2451_v47 = vld [vmem:[%s3564_s28 + $0x18] sm:$0xff]  ;;  %v2456_v48 = vld [vmem:[%s3564_s28 + $0xc8] sm:$0xff] }
  0x20   :  { %131 = vmatpush.msra.mxu0 %v2306_v23  ;;  %266 = vmatpush.msra.mxu3 %v2391_v37  ;;  %3569 = vst [vmem:[#allocation7_spill] sm:$0xff] %v2456_v48  ;;  %v2463_v49 = vld [vmem:[%s3564_s28 + $0x50] sm:$0xff]  ;;  %v2474_v51 = vld [vmem:[%s3564_s28 + $0xc0] sm:$0xff]  ;;  %v2481_v52 = vld [vmem:[%s3564_s28 + $0x48] sm:$0xff] }
  0x21   :  { %202 = vmatpush.msra.mxu2 %v2320_v25  ;;  %161 = vmatpush.msra.mxu1 %v2335_v28  ;;  %v2469_v50 = vld [vmem:[%s3564_s28 + $0x10] sm:$0xff]  ;;  %3570 = vst [vmem:[#allocation8_spill] sm:$0xff] %v2474_v51  ;;  %v2487_v53 = vld [vmem:[%s3564_s28 + $0x8] sm:$0xff]  ;;  %v2492_v54 = vld [vmem:[%s3564_s28 + $0xb8] sm:$0xff] }
  0x22   :  { %132 = vmatpush.msra.mxu0 %v2325_v26  ;;  %1781 = vmatmul.msk.f32.vlgmr.msra.gmra.mxu2 %vm76_vm0, %v169_v27  ;;  %3571 = vst [vmem:[#allocation9_spill] sm:$0xff] %v2492_v54  ;;  %v2497_v55 = vld [vmem:[%s3572_s29 + $0x98] sm:$0xff]  ;;  %v2504_v56 = vld [vmem:[%s3572_s29 + $0x48] sm:$0xff]  ;;  %v2511_v57 = vld [vmem:[%s3564_s28] sm:$0xff] }
  0x23   :  { %1768 = vmatmul.msk.f32.vlgmr.msra.gmra.mxu0 %vm76_vm0, %v2341_v29  ;;  %1770 = vmatmul.msk.f32.vlgmr.msra.gmra.mxu1 %vm76_vm0, %v88_v30  ;;  %3573 = vst [vmem:[#allocation10_spill] sm:$0xff] %v2497_v55  ;;  %v2516_v58 = vld [vmem:[%s3564_s28 + $0xb0] sm:$0xff]  ;;  %v2528_v60 = vld [vmem:[%s3572_s29 + $0x40] sm:$0xff]  ;;  %v2535_v61 = vld [vmem:[%s3564_s28 + $0xa8] sm:$0xff] }
  0x24   :  { %293 = vmatpush.msrb.mxu0 %v2383_v36  ;;  %267 = vmatpush.msra.mxu3 %v2403_v39  ;;  %3574 = vst [vmem:[#allocation11_spill] sm:$0xff] %v2504_v56  ;;  %v2521_v59 = vld [vmem:[%s3572_s29 + $0x90] sm:$0xff]  ;;  %v2540_v62 = vld [vmem:[%s3572_s29 + $0x88] sm:$0xff]  ;;  %v2545_v63 = vld [vmem:[%s3572_s29 + $0x38] sm:$0xff] }
  0x25   :  { %334 = vmatpush.msrb.mxu1 %v2438_v45  ;;  %402 = vmatpush.msrb.mxu2 %v2497_v55  ;;  %3575 = vst [vmem:[#allocation12_spill] sm:$0xff] %v2516_v58  ;;  %v2551_v27 = vld [vmem:[%s3564_s28 + $0xa0] sm:$0xff]  ;;  %v2574_v35 = vld [vmem:[%s3572_s29 + $0x78] sm:$0xff]  ;;  %v2579_v29 = vld [vmem:[%s3572_s29 + $0x28] sm:$0xff] }
  0x26   :  { %294 = vmatpush.msrb.mxu0 %v2397_v38  ;;  %268 = vmatpush.msra.mxu3 %v2415_v41  ;;  %3576 = vst [vmem:[#allocation13_spill] sm:$0xff] %v2521_v59  ;;  %v2556_v30 = vld [vmem:[%s3572_s29 + $0x80] sm:$0xff] }
  0x27   :  { %335 = vmatpush.msrb.mxu1 %v2456_v48  ;;  %3577 = vst [vmem:[#allocation14_spill] sm:$0xff] %v2528_v60  ;;  %403 = vmatpush.msrb.mxu2 %v2521_v59  ;;  %v2713_v48 = vld [vmem:[%s3572_s29 + $0xb0] sm:$0xff] }
  0x28   :  { %295 = vmatpush.msrb.mxu0 %v2409_v40  ;;  %269 = vmatpush.msra.mxu3 %v2427_v43  ;;  %3578 = vst [vmem:[#allocation15_spill] sm:$0xff] %v2535_v61 }
  0x29   :  { %336 = vmatpush.msrb.mxu1 %v2474_v51  ;;  %3579 = vst [vmem:[#allocation16_spill] sm:$0xff] %v2540_v62  ;;  %404 = vmatpush.msrb.mxu2 %v2540_v62  ;;  %v2670_v51 = vld [vmem:[%s3572_s29 + $0x50] sm:$0xff] }
  0x2a   :  { %1782 = vmatmul.msk.f32.gmra.mxu2 %vm76_vm0, %v170_v31  ;;  %296 = vmatpush.msrb.mxu0 %v2421_v42  ;;  %3580 = vst [vmem:[#allocation17_spill] sm:$0xff] %v2545_v63  ;;  %v2561_v31 = vld [vmem:[%s3572_s29 + $0x30] sm:$0xff] }
  0x2b   :  { %1769 = vmatmul.msk.f32.gmra.mxu0 %vm76_vm0, %v2359_v32  ;;  %1771 = vmatmul.msk.f32.gmra.mxu1 %vm76_vm0, %v89_v33  ;;  %3581 = vst [vmem:[#allocation18_spill] sm:$0xff] %v2551_v27  ;;  %v2568_v33 = vld [vmem:[%s3564_s28 + $0x98] sm:$0xff]  ;;  %v2584_v32 = vld [vmem:[%s3572_s29 + $0xe8] sm:$0xff] }
  0x2c   :  { %297 = vmatpush.msrb.mxu0 %v2433_v44  ;;  %270 = vmatpush.msra.mxu3 %v2445_v46  ;;  %3582 = vst [vmem:[#allocation19_spill] sm:$0xff] %v2556_v30 }
  0x2d   :  { %337 = vmatpush.msrb.mxu1 %v2492_v54  ;;  %3583 = vst [vmem:[#allocation20_spill] sm:$0xff] %v2561_v31  ;;  %405 = vmatpush.msrb.mxu2 %v2556_v30  ;;  %v2603_v30 = vld [vmem:[%s3572_s29 + $0x70] sm:$0xff] }
  0x2e   :  { %298 = vmatpush.msrb.mxu0 %v2451_v47  ;;  %271 = vmatpush.msra.mxu3 %v2463_v49  ;;  %3584 = vst [vmem:[#allocation21_spill] sm:$0xff] %v2568_v33  ;;  %v2646_v54 = vld [vmem:[%s3572_s29 + $0xd0] sm:$0xff] }
  0x2f   :  { %338 = vmatpush.msrb.mxu1 %v2516_v58  ;;  %3585 = vst [vmem:[#allocation22_spill] sm:$0xff] %v2574_v35  ;;  %v2608_v58 = vld [vmem:[%s3572_s29 + $0x20] sm:$0xff]  ;;  %406 = vmatpush.msrb.mxu2 %v2574_v35 }
  0x30   :  { %299 = vmatpush.msrb.mxu0 %v2469_v50  ;;  %272 = vmatpush.msra.mxu3 %v2481_v52  ;;  %3586 = vst [vmem:[#allocation23_spill] sm:$0xff] %v2579_v29 }
  0x31   :  { %339 = vmatpush.msrb.mxu1 %v2535_v61  ;;  %v2596_v61 = vld [vmem:[%s3572_s29 + $0xe0] sm:$0xff]  ;;  %3588 = vst [vmem:[#allocation25_spill] sm:$0xff] %v2603_v30  ;;  %407 = vmatpush.msrb.mxu2 %v2603_v30 }
  0x32   :  { %300 = vmatpush.msrb.mxu0 %v2487_v53  ;;  %425 = vmatpush.msrb.mxu3 %v2504_v56  ;;  %3589 = vst [vmem:[#allocation26_spill] sm:$0xff] %v2608_v58  ;;  %v2636_v30 = vld [vmem:[%s3572_s29 + $0x60] sm:$0xff]  ;;  %v2719_v56 = vld [vmem:[%s3572_s29 + $0xa8] sm:$0xff] }
  0x33   :  { %340 = vmatpush.msrb.mxu1 %v2551_v27  ;;  %v2591_v27 = vld [vmem:[%s3564_s28 + $0x90] sm:$0xff]  ;;  %3592 = vst [vmem:[#allocation29_spill] sm:$0xff] %v2636_v30 }
  0x34   :  { %301 = vmatpush.msrb.mxu0 %v2511_v57  ;;  %426 = vmatpush.msrb.mxu3 %v2528_v60  ;;  %3587 = vst [vmem:[#allocation24_spill] sm:$0xff] %v2591_v27  ;;  %v2016_v60 = vld [vmem:[%s3601_s3] ss:$0 sm:$0xff] }
  0x35   :  { %341 = vmatpush.msrb.mxu1 %v2568_v33  ;;  %v2619_v33 = vld [vmem:[%s3572_s29 + $0x68] sm:$0xff]  ;;  %3597 = vst [vmem:[#allocation34_spill] sm:$0xff] %v2670_v51 }
  0x36   :  { %427 = vmatpush.msrb.mxu3 %v2545_v63  ;;  %460 = vmatpush.msra.mxu0 %v2584_v32  ;;  %3590 = vst [vmem:[#allocation27_spill] sm:$0xff] %v2619_v33  ;;  %v2664_v63 = vld [vmem:[%s3572_s29 + $0xc8] sm:$0xff] }
  0x37   :  { %342 = vmatpush.msrb.mxu1 %v2591_v27  ;;  %v2629_v27 = vld [vmem:[%s3572_s29 + $0xd8] sm:$0xff]  ;;  %408 = vmatpush.msrb.mxu2 %v2619_v33  ;;  %3596 = vst [vmem:[#allocation33_spill] sm:$0xff] %v2664_v63 }
  0x38   :  { %428 = vmatpush.msrb.mxu3 %v2561_v31  ;;  %461 = vmatpush.msra.mxu0 %v2596_v61  ;;  %v2624_v31 = vld [vmem:[%s3572_s29 + $0x18] sm:$0xff] }
  0x39   :  { %3591 = vst [vmem:[#allocation28_spill] sm:$0xff] %v2624_v31  ;;  %v2652_v33 = vld [vmem:[%s3572_s29 + $0x58] sm:$0xff]  ;;  %409 = vmatpush.msrb.mxu2 %v2636_v30  ;;  %v2685_v30 = vld [vmem:[%s3572_s29 + $0xc0] sm:$0xff] }
  0x3a   :  { %429 = vmatpush.msrb.mxu3 %v2579_v29  ;;  %462 = vmatpush.msra.mxu0 %v2629_v27  ;;  %3594 = vst [vmem:[#allocation31_spill] sm:$0xff] %v2652_v33 }
  0x3b   :  { %410 = vmatpush.msrb.mxu2 %v2652_v33  ;;  %3600 = vst [vmem:[#allocation36_spill] sm:$0xff] %v2685_v30  ;;  %v2696_v33 = vld [vmem:[%s3602_s4 + $0x1] sm:$0xff] }
  0x3c   :  { %430 = vmatpush.msrb.mxu3 %v2608_v58  ;;  %v2641_v58 = vld [vmem:[%s3572_s29 + $0x10] sm:$0xff]  ;;  %463 = vmatpush.msra.mxu0 %v2646_v54  ;;  %3603 = vst [vmem:[#allocation37_spill] sm:$0xff] %v2696_v33 }
  0x3d   :  { %3593 = vst [vmem:[#allocation30_spill] sm:$0xff] %v2641_v58  ;;  %411 = vmatpush.msrb.mxu2 %v2670_v51 }
  0x3e   :  { %431 = vmatpush.msrb.mxu3 %v2624_v31  ;;  %v2657_v31 = vld [vmem:[%s3572_s29 + $0x8] sm:$0xff]  ;;  %464 = vmatpush.msra.mxu0 %v2664_v63 }
  0x3f   :  { %3595 = vst [vmem:[#allocation32_spill] sm:$0xff] %v2657_v31  ;;  %1817 = vmatmul.msk.f32.vlgmr.msrb.gmra.mxu2 %vm83_vm1, %v2696_v33 }
  0x40   :  { %432 = vmatpush.msrb.mxu3 %v2641_v58  ;;  %465 = vmatpush.msra.mxu0 %v2685_v30 }
  0x42   :  { %433 = vmatpush.msrb.mxu3 %v2657_v31 }
  0xa0   :  { %v134_v35 = vpop.f32.mrf.mxu0  ;;  %v163_v29 = vpop.f32.mrf.mxu1 }
  0xa1   :  { %v164_v62 = vadd.f32 %v163_v29, %v134_v35  ;;  %v2675_v29 = vld [vmem:[%s3572_s29] sm:$0xff] }
  0xa2   :  { %3598 = vst [vmem:[#allocation35_spill] sm:$0xff] %v2675_v29  ;;  %v2015_v35 = vld [vmem:[%s3599_s2] ss:$0 sm:$0xff]  ;;  %434 = vmatpush.msrb.mxu3 %v2675_v29 }
  0xa5   :  { %v204_v58 = vpop.f32.mrf.mxu2 }
  0xa6   :  { %v210_v59 = vadd.f32 %v204_v58, %v164_v62  ;;  %v3604_v58 = vmov 0.0   ;;  %v2706_v62 = vld [vmem:[%s3572_s29 + $0xb8] sm:$0xff] }
  0xa7   :  { %84 = vst.msk [vmem:[#allocation3] sm:$0xff] %vm83_vm1, %v3604_v58  ;;  %466 = vmatpush.msra.mxu0 %v2706_v62 }
  0xa8   :  { %3605 = vst [vmem:[#allocation38_spill] sm:$0xff] %v2706_v62  ;;  %v216_v51 = vmul.f32 %v2015_v35, %v210_v59  ;;  %v137_v29 = vpop.f32.mrf.mxu0  ;;  %v166_v31 = vpop.f32.mrf.mxu1 }
  0xa9   :  { %85 = vst.msk [vmem:[#allocation3 + $0x8] sm:$0xff] %vm83_vm1, %v3604_v58  ;;  %v167_v55 = vadd.f32 %v166_v31, %v137_v29  ;;  %467 = vmatpush.msra.mxu0 %v2713_v48  ;;  %v2725_v58 = vld [vmem:[%s3572_s29 + $0xa0] sm:$0xff] }
  0xaa   :  { %v222_v33 = vadd.f32 %v2016_v60, %v216_v51 }
  0xab   :  { %468 = vmatpush.msra.mxu0 %v2719_v56 }
  0xac   :  { %v224_v59 = vmax.f32 %v222_v33, 0.0 }
  0xad   :  { %v207_v45 = vpop.f32.mrf.mxu2  ;;  %469 = vmatpush.msra.mxu0 %v2725_v58 }
  0xae   :  { %226 = vst.msk [vmem:[#allocation2 + $0x1] sm:$0xff] %vm76_vm0, %v224_v59  ;;  %v211_v51 = vadd.f32 %v207_v45, %v167_v55  ;;  %v2886_v59 = vld [vmem:[%s3492_s11 + $0xc8] sm:$0xff] }
  0xb0   :  { %v217_v31 = vmul.f32 %v2015_v35, %v211_v51  ;;  %v2874_v35 = vld [vmem:[%s3492_s11 + $0x68] sm:$0xff]  ;;  %v2892_v51 = vld [vmem:[%s3492_s11 + $0x60] sm:$0xff] }
  0xb2   :  { %v223_v29 = vadd.f32 %v2016_v60, %v217_v31  ;;  %v2856_v60 = vld [vmem:[%s3492_s11 + $0x70] sm:$0xff]  ;;  %v2897_v31 = vld [vmem:[%s3492_s11] sm:$0xff] }
  0xb4   :  { %v225_v62 = vmax.f32 %v223_v29, 0.0  ;;  %v2904_v29 = vld [vmem:[%s3492_s11 + $0xc0] sm:$0xff] }
  0xb5   :  { %v239_v30 = vld [vmem:[#allocation2 + $0x1] sm:$0xff] }
  0xb6   :  { %v228_v63 = vld [vmem:[#allocation2] sm:$0xff]  ;;  %227 = vst.msk [vmem:[#allocation2 + $0x9] sm:$0xff] %vm76_vm0, %v225_v62  ;;  %1792 = vmatmul.msk.f32.vlgmr.msra.gmra.mxu3 %vm76_vm0, %v239_v30  ;;  %v2868_v30 = vld [vmem:[%s3492_s11 + $0xd0] sm:$0xff]  ;;  %v2879_v62 = vld [vmem:[%s3492_s11 + $0x8] sm:$0xff] }
  0xb7   :  { %1794 = vmatmul.msk.f32.vlgmr.msrb.gmra.mxu0 %vm76_vm0, %v228_v63  ;;  %v2861_v63 = vld [vmem:[%s3492_s11 + $0x10] sm:$0xff] }
  0xb8   :  { %640 = vmatpush.msrb.mxu0 %v2183_v2  ;;  %v370_v2 = vld [vmem:[%s3602_s4] sm:$0xff] }
  0xba   :  { %641 = vmatpush.msrb.mxu0 %v2195_v4  ;;  %v439_v4 = vld [vmem:[%s3602_s4 + $0x2] sm:$0xff] }
  0xbc   :  { %642 = vmatpush.msrb.mxu0 %v2211_v7 }
  0xbd   :  { %v240_v45 = vld [vmem:[#allocation2 + $0x9] sm:$0xff] }
  0xbe   :  { %v229_v55 = vld [vmem:[#allocation2 + $0x8] sm:$0xff]  ;;  %643 = vmatpush.msrb.mxu0 %v2229_v10  ;;  %1793 = vmatmul.msk.f32.gmra.mxu3 %vm76_vm0, %v240_v45  ;;  %v2911_v45 = vld [vmem:[%s3492_s11 + $0x58] sm:$0xff] }
  0xbf   :  { %v309_v33 = vld [vmem:[#allocation2 + $0x2] sm:$0xff]  ;;  %1795 = vmatmul.msk.f32.gmra.mxu0 %vm76_vm0, %v229_v55  ;;  %v310_v7 = vld [vmem:[#allocation2 + $0xa] sm:$0xff]  ;;  %v2916_v55 = vld [vmem:[%s3492_s11 + $0xb8] sm:$0xff] }
  0xc0   :  { %1805 = vmatmul.msk.f32.vlgmr.msrb.gmra.mxu1 %vm76_vm0, %v309_v33  ;;  %644 = vmatpush.msrb.mxu0 %v2247_v13  ;;  %v2766_v10 = vld [vmem:[%s3492_s11 + $0x48] sm:$0xff]  ;;  %v2772_v13 = vld [vmem:[%s3492_s11 + $0x40] sm:$0xff]  ;;  %3606 = vst [vmem:[#allocation39_spill] sm:$0xff] %v2916_v55  ;;  %v2921_v33 = vld [vmem:[%s3492_s11 + $0x50] sm:$0xff] }
  0xc1   :  { %542 = vmatpush.msra.mxu2 %v2766_v10 }
  0xc2   :  { %645 = vmatpush.msrb.mxu0 %v2265_v16  ;;  %v2778_v16 = vld [vmem:[%s3492_s11 + $0x98] sm:$0xff] }
  0xc3   :  { %543 = vmatpush.msra.mxu2 %v2772_v13  ;;  %519 = vmatpush.msra.mxu1 %v2778_v16 }
  0xc4   :  { %646 = vmatpush.msrb.mxu0 %v2283_v19  ;;  %v2783_v19 = vld [vmem:[%s3492_s11 + $0x38] sm:$0xff] }
  0xc5   :  { %544 = vmatpush.msra.mxu2 %v2783_v19 }
  0xc6   :  { %647 = vmatpush.msrb.mxu0 %v2306_v23  ;;  %1818 = vmatmul.msk.f32.vlgmr.msrb.gmra.mxu3 %vm83_vm1, %v370_v2  ;;  %v2790_v23 = vld [vmem:[%s3492_s11 + $0x90] sm:$0xff] }
  0xc7   :  { %1829 = vmatmul.msk.f32.vlgmr.msra.gmra.mxu0 %vm83_vm1, %v439_v4  ;;  %520 = vmatpush.msra.mxu1 %v2790_v23  ;;  %v2935_v4 = vld [vmem:[%s3492_s11 + $0xa8] sm:$0xff] }
  0xc8   :  { %1806 = vmatmul.msk.f32.gmra.mxu1 %vm76_vm0, %v310_v7  ;;  %648 = vmatpush.msrb.mxu0 %v2325_v26  ;;  %v2795_v26 = vld [vmem:[%s3492_s11 + $0x30] sm:$0xff] }
  0xc9   :  { %545 = vmatpush.msra.mxu2 %v2795_v26 }
  0xca   :  { %807 = vmatpush.msra.mxu0 %v2383_v36  ;;  %v2802_v36 = vld [vmem:[%s3492_s11 + $0x88] sm:$0xff] }
  0xcb   :  { %521 = vmatpush.msra.mxu1 %v2802_v36 }
  0xcc   :  { %808 = vmatpush.msra.mxu0 %v2397_v38  ;;  %v2807_v38 = vld [vmem:[%s3492_s11 + $0x28] sm:$0xff] }
  0xcd   :  { %546 = vmatpush.msra.mxu2 %v2807_v38 }
  0xce   :  { %809 = vmatpush.msra.mxu0 %v2409_v40  ;;  %v2814_v40 = vld [vmem:[%s3492_s11 + $0xe8] sm:$0xff] }
  0xcf   :  { %577 = vmatpush.msra.mxu3 %v2814_v40 }
  0xd0   :  { %810 = vmatpush.msra.mxu0 %v2421_v42  ;;  %v2820_v42 = vld [vmem:[%s3492_s11 + $0x80] sm:$0xff] }
  0xd1   :  { %522 = vmatpush.msra.mxu1 %v2820_v42 }
  0xd2   :  { %811 = vmatpush.msra.mxu0 %v2433_v44  ;;  %v2825_v44 = vld [vmem:[%s3492_s11 + $0x20] sm:$0xff] }
  0xd3   :  { %547 = vmatpush.msra.mxu2 %v2825_v44 }
  0xd4   :  { %812 = vmatpush.msra.mxu0 %v2451_v47  ;;  %v2832_v47 = vld [vmem:[%s3492_s11 + $0xe0] sm:$0xff] }
  0xd5   :  { %578 = vmatpush.msra.mxu3 %v2832_v47 }
  0xd6   :  { %813 = vmatpush.msra.mxu0 %v2469_v50  ;;  %v2838_v50 = vld [vmem:[%s3492_s11 + $0x78] sm:$0xff] }
  0xd7   :  { %523 = vmatpush.msra.mxu1 %v2838_v50 }
  0xd8   :  { %814 = vmatpush.msra.mxu0 %v2487_v53  ;;  %v2843_v53 = vld [vmem:[%s3492_s11 + $0x18] sm:$0xff] }
  0xd9   :  { %548 = vmatpush.msra.mxu2 %v2843_v53  ;;  %524 = vmatpush.msra.mxu1 %v2856_v60 }
  0xda   :  { %815 = vmatpush.msra.mxu0 %v2511_v57  ;;  %v2850_v57 = vld [vmem:[%s3492_s11 + $0xd8] sm:$0xff] }
  0xdb   :  { %579 = vmatpush.msra.mxu3 %v2850_v57  ;;  %549 = vmatpush.msra.mxu2 %v2861_v63 }
  0xdc   :  { %525 = vmatpush.msra.mxu1 %v2874_v35 }
  0xdd   :  { %580 = vmatpush.msra.mxu3 %v2868_v30  ;;  %550 = vmatpush.msra.mxu2 %v2879_v62 }
  0xde   :  { %526 = vmatpush.msra.mxu1 %v2892_v51 }
  0xdf   :  { %581 = vmatpush.msra.mxu3 %v2886_v59  ;;  %551 = vmatpush.msra.mxu2 %v2897_v31 }
  0xe0   :  { %527 = vmatpush.msra.mxu1 %v2911_v45 }
  0xe1   :  { %582 = vmatpush.msra.mxu3 %v2904_v29  ;;  %709 = vmatpush.msrb.mxu2 %v2173_v0  ;;  %v2927_v0 = vld [vmem:[%s3492_s11 + $0xb0] sm:$0xff] }
  0xe2   :  { %528 = vmatpush.msra.mxu1 %v2921_v33 }
  0xe3   :  { %583 = vmatpush.msra.mxu3 %v2916_v55  ;;  %710 = vmatpush.msrb.mxu2 %v2178_v1  ;;  %v2943_v55 = vld [vmem:[%s3492_s11 + $0xa0] sm:$0xff]  ;;  %s2043_s11 = smov 64  }
  0xe4   :  { %669 = vmatpush.msrb.mxu1 %v2190_v3 }
  0xe5   :  { %584 = vmatpush.msra.mxu3 %v2927_v0  ;;  %711 = vmatpush.msrb.mxu2 %v2201_v5 }
  0xe6   :  { %670 = vmatpush.msrb.mxu1 %v2206_v6 }
  0xe7   :  { %585 = vmatpush.msra.mxu3 %v2935_v4  ;;  %712 = vmatpush.msrb.mxu2 %v2224_v9  ;;  %v413_v9 = vpop.f32.mrf.mxu2 }
  0xe8   :  { %671 = vmatpush.msrb.mxu1 %v2218_v8  ;;  %v2969_v8 = vld [vmem:[%s3565_s26 + $0x13] sm:$0xff] }
  0xe9   :  { %586 = vmatpush.msra.mxu3 %v2943_v55  ;;  %713 = vmatpush.msrb.mxu2 %v2242_v12 }
  0xea   :  { %672 = vmatpush.msrb.mxu1 %v2236_v11  ;;  %1862 = vmatmul.msk.f32.vlgmr.msrb.gmra.mxu0 %vm76_vm0, %v2969_v8 }
  0xeb   :  { %778 = vmatpush.msrb.mxu3 %v2295_v21  ;;  %714 = vmatpush.msrb.mxu2 %v2260_v15  ;;  %v2019_v15 = vld [vmem:[%s3490_s9] ss:$0 sm:$0xff] }
  0xec   :  { %673 = vmatpush.msrb.mxu1 %v2254_v14  ;;  %971 = vmatpush.msrb.mxu0 %v2584_v32  ;;  %v3609_v32 = vld [vmem:[#allocation38_spill] sm:$0xff] }
  0xed   :  { %779 = vmatpush.msrb.mxu3 %v2371_v34  ;;  %715 = vmatpush.msrb.mxu2 %v2278_v18  ;;  %v2020_v18 = vld [vmem:[%s3491_s10] ss:$0 sm:$0xff] }
  0xee   :  { %674 = vmatpush.msrb.mxu1 %v2272_v17  ;;  %972 = vmatpush.msrb.mxu0 %v2596_v61  ;;  %v3616_v61 = vld [vmem:[#allocation8_spill] sm:$0xff] }
  0xef   :  { %780 = vmatpush.msrb.mxu3 %v2391_v37  ;;  %716 = vmatpush.msrb.mxu2 %v2301_v22 }
  0xf0   :  { %675 = vmatpush.msrb.mxu1 %v2290_v20  ;;  %973 = vmatpush.msrb.mxu0 %v2629_v27  ;;  %v2991_v20 = vld [vmem:[%s3565_s26 + $0x1b] sm:$0xff]  ;;  %v3617_v27 = vld [vmem:[#allocation17_spill] sm:$0xff] }
  0xf1   :  { %781 = vmatpush.msrb.mxu3 %v2403_v39  ;;  %717 = vmatpush.msrb.mxu2 %v2320_v25 }
  0xf2   :  { %676 = vmatpush.msrb.mxu1 %v2314_v24  ;;  %1863 = vmatmul.msk.f32.gmra.mxu0 %vm76_vm0, %v2991_v20  ;;  %v3607_v24 = vld [vmem:[#allocation33_spill] sm:$0xff] }
  0xf3   :  { %782 = vmatpush.msrb.mxu3 %v2415_v41  ;;  %974 = vmatpush.msrb.mxu0 %v2646_v54  ;;  %v3610_v41 = vld [vmem:[#allocation6_spill] sm:$0xff]  ;;  %v3615_v54 = vld [vmem:[#allocation13_spill] sm:$0xff] }
  0xf4   :  { %677 = vmatpush.msrb.mxu1 %v2335_v28  ;;  %v3608_v28 = vld [vmem:[#allocation36_spill] sm:$0xff] }
  0xf5   :  { %783 = vmatpush.msrb.mxu3 %v2427_v43  ;;  %975 = vmatpush.msrb.mxu0 %v3607_v24  ;;  %v3611_v43 = vld [vmem:[#allocation11_spill] sm:$0xff]  ;;  %v3630_v24 = vld [vmem:[#allocation21_spill] sm:$0xff] }
  0xf7   :  { %784 = vmatpush.msrb.mxu3 %v2445_v46  ;;  %976 = vmatpush.msrb.mxu0 %v3608_v28  ;;  %v3612_v46 = vld [vmem:[#allocation10_spill] sm:$0xff]  ;;  %v3632_v28 = vld [vmem:[#allocation24_spill] sm:$0xff] }
  0xf9   :  { %785 = vmatpush.msrb.mxu3 %v2463_v49  ;;  %977 = vmatpush.msrb.mxu0 %v3609_v32  ;;  %v685_v49 = vld [vmem:[%s3565_s26 + $0x14] sm:$0xff] }
  0xfa   :  { %v3633_v32 = vld [vmem:[#allocation27_spill] sm:$0xff] }
  0xfb   :  { %786 = vmatpush.msrb.mxu3 %v2481_v52  ;;  %978 = vmatpush.msrb.mxu0 %v2713_v48  ;;  %v3613_v48 = vld [vmem:[#allocation7_spill] sm:$0xff]  ;;  %v3614_v52 = vld [vmem:[#allocation14_spill] sm:$0xff] }
  0xfd   :  { %979 = vmatpush.msrb.mxu0 %v2719_v56  ;;  %v605_v56 = vld [vmem:[%s3565_s26 + $0x12] sm:$0xff] }
  0xff   :  { %980 = vmatpush.msrb.mxu0 %v2725_v58  ;;  %v3618_v58 = vld [vmem:[#allocation16_spill] sm:$0xff] }
 0x134   :  { %v303_v2 = vpop.f32.mrf.mxu0 }
 0x139   :  { %v274_v7 = vpop.f32.mrf.mxu3 }
 0x13a   :  { %v2945_v1 = vadd.f32 %v303_v2, %v274_v7  ;;  %v3619_v2 = vld [vmem:[#allocation9_spill] sm:$0xff]  ;;  %v3620_v7 = vld [vmem:[#allocation20_spill] sm:$0xff] }
 0x13c   :  { %v306_v3 = vpop.f32.mrf.mxu0 }
 0x141   :  { %v277_v5 = vpop.f32.mrf.mxu3 }
 0x142   :  { %v2960_v6 = vadd.f32 %v306_v3, %v277_v5  ;;  %v3621_v3 = vld [vmem:[#allocation12_spill] sm:$0xff]  ;;  %v3622_v5 = vld [vmem:[#allocation19_spill] sm:$0xff] }
 0x144   :  { %v471_v12 = vpop.f32.mrf.mxu0 }
 0x149   :  { %v436_v11 = vpop.f32.mrf.mxu3 }
 0x14a   :  { %v437_v14 = vadd.f32 %v436_v11, %v413_v9  ;;  %v3623_v9 = vld [vmem:[#allocation23_spill] sm:$0xff] }
 0x14b   :  { %v3624_v11 = vld [vmem:[#allocation15_spill] sm:$0xff] }
 0x14c   :  { %v474_v17 = vadd.f32 %v471_v12, %v437_v14  ;;  %v3625_v12 = vld [vmem:[#allocation22_spill] sm:$0xff]  ;;  %v686_v14 = vld [vmem:[%s3565_s26 + $0x1c] sm:$0xff] }
 0x14e   :  { %v479_v21 = vmul.f32 %v2019_v15, %v474_v17  ;;  %v606_v15 = vld [vmem:[%s3565_s26 + $0x1a] sm:$0xff]  ;;  %v3626_v17 = vld [vmem:[#allocation26_spill] sm:$0xff] }
 0x150   :  { %v484_v22 = vadd.f32 %v2020_v18, %v479_v21  ;;  %v3627_v18 = vld [vmem:[#allocation18_spill] sm:$0xff]  ;;  %v3628_v21 = vld [vmem:[#allocation25_spill] sm:$0xff] }
 0x152   :  { %v485_v25 = vmax.f32 %v484_v22, 0.0  ;;  %v3629_v22 = vld [vmem:[#allocation28_spill] sm:$0xff] }
 0x154   :  { %486 = vst.msk [vmem:[#allocation3 + $0x1] sm:$0xff] %vm83_vm1, %v485_v25  ;;  %v3631_v25 = vld [vmem:[#allocation30_spill] sm:$0xff] }
 0x15b   :  { %v498_v34 = vld [vmem:[#allocation3 + $0x1] sm:$0xff] }
 0x15c   :  { %v487_v37 = vld [vmem:[#allocation3] sm:$0xff]  ;;  %1840 = vmatmul.msk.f32.vlgmr.msra.gmra.mxu1 %vm83_vm1, %v498_v34  ;;  %v3634_v34 = vld [vmem:[#allocation32_spill] sm:$0xff] }
 0x15d   :  { %v556_v39 = vld [vmem:[#allocation3 + $0x2] sm:$0xff]  ;;  %1841 = vmatmul.msk.f32.vlgmr.msra.gmra.mxu2 %vm83_vm1, %v487_v37  ;;  %847 = vmatpush.msra.mxu1 %v3610_v41  ;;  %v3637_v41 = vld [vmem:[#allocation31_spill] sm:$0xff] }
 0x15e   :  { %1852 = vmatmul.msk.f32.vlgmr.msra.gmra.mxu3 %vm83_vm1, %v556_v39  ;;  %914 = vmatpush.msra.mxu2 %v3612_v46  ;;  %v3635_v37 = vld [vmem:[#allocation29_spill] sm:$0xff]  ;;  %v3636_v39 = vld [vmem:[#allocation35_spill] sm:$0xff] }
 0x15f   :  { %937 = vmatpush.msra.mxu3 %v3611_v43  ;;  %848 = vmatpush.msra.mxu1 %v3613_v48  ;;  %v3638_v43 = vld [vmem:[#allocation34_spill] sm:$0xff] }
 0x160   :  { %915 = vmatpush.msra.mxu2 %v3615_v54  ;;  %v3090_v48 = vld [vmem:[%s3602_s4 + $0xb] sm:$0xff] }
 0x161   :  { %938 = vmatpush.msra.mxu3 %v3614_v52  ;;  %849 = vmatpush.msra.mxu1 %v3616_v61 }
 0x162   :  { %916 = vmatpush.msra.mxu2 %v3618_v58 }
 0x163   :  { %939 = vmatpush.msra.mxu3 %v3617_v27  ;;  %850 = vmatpush.msra.mxu1 %v3619_v2 }
 0x164   :  { %1864 = vmatmul.msk.f32.vlgmr.msrb.gmra.mxu1 %vm76_vm0, %v605_v56  ;;  %917 = vmatpush.msra.mxu2 %v3622_v5 }
 0x165   :  { %1875 = vmatmul.msk.f32.vlgmr.msrb.gmra.mxu2 %vm76_vm0, %v685_v49  ;;  %940 = vmatpush.msra.mxu3 %v3620_v7 }
 0x166   :  { %851 = vmatpush.msra.mxu1 %v3621_v3  ;;  %918 = vmatpush.msra.mxu2 %v3625_v12 }
 0x167   :  { %941 = vmatpush.msra.mxu3 %v3623_v9 }
 0x168   :  { %852 = vmatpush.msra.mxu1 %v3624_v11  ;;  %919 = vmatpush.msra.mxu2 %v3628_v21  ;;  %v1121_v11 = vld [vmem:[%s3495_s14 + $0x38] sm:$0xff] }
 0x169   :  { %942 = vmatpush.msra.mxu3 %v3626_v17 }
 0x16a   :  { %853 = vmatpush.msra.mxu1 %v3627_v18  ;;  %920 = vmatpush.msra.mxu2 %v3633_v32  ;;  %v1119_v18 = vld [vmem:[%s3495_s14 + $0x28] sm:$0xff]  ;;  %v2018_v32 = vld [vmem:[%s3642_s30] ss:$0 sm:$0xff] }
 0x16b   :  { %943 = vmatpush.msra.mxu3 %v3629_v22  ;;  %v2017_v22 = vld [vmem:[%s3641_s8] ss:$0 sm:$0xff] }
 0x16c   :  { %854 = vmatpush.msra.mxu1 %v3630_v24  ;;  %921 = vmatpush.msra.mxu2 %v3635_v37  ;;  %v1117_v24 = vld [vmem:[%s3495_s14 + $0x18] sm:$0xff] }
 0x16d   :  { %1876 = vmatmul.msk.f32.gmra.mxu2 %vm76_vm0, %v686_v14  ;;  %1865 = vmatmul.msk.f32.gmra.mxu1 %vm76_vm0, %v606_v15  ;;  %v1120_v15 = vld [vmem:[%s3495_s14 + $0x30] sm:$0xff] }
 0x16e   :  { %944 = vmatpush.msra.mxu3 %v3631_v25  ;;  %855 = vmatpush.msra.mxu1 %v3632_v28 }
 0x16f   :  { %922 = vmatpush.msra.mxu2 %v3637_v41  ;;  %v951_v41 = vld [vmem:[%s3602_s4 + $0xc] sm:$0xff] }
 0x170   :  { %1029 = vmatpush.msrb.mxu1 %v2778_v16  ;;  %945 = vmatpush.msra.mxu3 %v3634_v34  ;;  %v3639_v16 = vmov 0.0   ;;  %v1115_v34 = vld [vmem:[%s3495_s14 + $0x8] sm:$0xff] }
 0x171   :  { %923 = vmatpush.msra.mxu2 %v3638_v43  ;;  %82 = vst.msk [vmem:[#allocation2 + $0x20] sm:$0xf] %vm81_vm2, %v3639_v16  ;;  %v3644_v43 = vld [vmem:[#allocation5_spill] sm:$0xff] }
 0x172   :  { %1030 = vmatpush.msrb.mxu1 %v2790_v23  ;;  %946 = vmatpush.msra.mxu3 %v3636_v39  ;;  %v3643_v39 = vld [vmem:[#allocation39_spill] sm:$0xff]  ;;  %87 = vst.msk [vmem:[#allocation3 + $0x10] sm:$0xf] %vm86_vm4, %v3639_v16 }
 0x173   :  { %1052 = vmatpush.msrb.mxu2 %v2766_v10  ;;  %v344_v10 = vpop.f32.mrf.mxu1 }
 0x174   :  { %1031 = vmatpush.msrb.mxu1 %v2802_v36  ;;  %v350_v21 = vadd.f32 %v344_v10, %v2945_v1 }
 0x175   :  { %1053 = vmatpush.msrb.mxu2 %v2772_v13 }
 0x176   :  { %1032 = vmatpush.msrb.mxu1 %v2820_v42  ;;  %1911 = vmatmul.msk.f32.vlgmr.msra.gmra.mxu2 %vm83_vm1, %v3090_v48  ;;  %v356_v28 = vmul.f32 %v2017_v22, %v350_v21  ;;  %v3219_v21 = vld [vmem:[%s3499_s20 + $0xb8] sm:$0xff] }
 0x177   :  { %1054 = vmatpush.msrb.mxu2 %v2783_v19 }
 0x178   :  { %1033 = vmatpush.msrb.mxu1 %v2838_v50  ;;  %v362_v37 = vadd.f32 %v2018_v32, %v356_v28  ;;  %v2030_v28 = vld [vmem:[%s3497_s16] ss:$0 sm:$0xff] }
 0x179   :  { %1055 = vmatpush.msrb.mxu2 %v2795_v26  ;;  %v650_v26 = vpop.f32.mrf.mxu0 }
 0x17a   :  { %1034 = vmatpush.msrb.mxu1 %v2856_v60 }
 0x17b   :  { %1056 = vmatpush.msrb.mxu2 %v2807_v38  ;;  %v347_v13 = vpop.f32.mrf.mxu1  ;;  %v2021_v38 = vld [vmem:[%s3493_s12] ss:$0 sm:$0xff] }
 0x17c   :  { %1035 = vmatpush.msrb.mxu1 %v2874_v35  ;;  %v2022_v35 = vld [vmem:[%s3599_s2] ss:$0 sm:$0xff]  ;;  %s2040_s2 = smov 120   ;;  %v351_v17 = vadd.f32 %v347_v13, %v2960_v6 }
 0x17d   :  { %1057 = vmatpush.msrb.mxu2 %v2825_v44  ;;  %v3645_v13 = vld [vmem:[#allocation4_spill] sm:$0xff] }
 0x17e   :  { %1036 = vmatpush.msrb.mxu1 %v2892_v51  ;;  %v357_v6 = vmul.f32 %v2017_v22, %v351_v17  ;;  %v3207_v17 = vld [vmem:[%s3499_s20 + $0xc8] sm:$0xff] }
 0x17f   :  { %1058 = vmatpush.msrb.mxu2 %v2843_v53  ;;  %v2024_v53 = vld [vmem:[%s3494_s13] ss:$0 sm:$0xff]  ;;  %v3225_v22 = vld [vmem:[%s3498_s19 + $0x8] sm:$0xff] }
 0x180   :  { %1037 = vmatpush.msrb.mxu1 %v2911_v45  ;;  %v2023_v45 = vld [vmem:[%s3601_s3] ss:$0 sm:$0xff]  ;;  %s2044_s3 = smov 60  }
 0x181   :  { %1059 = vmatpush.msrb.mxu2 %v2861_v63  ;;  %v653_v49 = vpop.f32.mrf.mxu0 }
 0x182   :  { %1038 = vmatpush.msrb.mxu1 %v2921_v33  ;;  %v3640_v33 = vld [vmem:[#allocation37_spill] sm:$0xff] }
 0x183   :  { %1060 = vmatpush.msrb.mxu2 %v2879_v62 }
 0x185   :  { %1061 = vmatpush.msrb.mxu2 %v2897_v31 }
 0x1d9   :  { %v530_v19 = vpop.f32.mrf.mxu1 }
 0x1e0   :  { %v553_v23 = vpop.f32.mrf.mxu2 }
 0x1e1   :  { %v554_v36 = vadd.f32 %v553_v23, %v530_v19  ;;  %v588_v42 = vpop.f32.mrf.mxu3  ;;  %v679_v44 = vpop.f32.mrf.mxu1  ;;  %v366_v19 = vadd.f32 %v362_v37, %v3645_v13  ;;  %v3276_v37 = vld [vmem:[%s3499_s20 + $0x88] sm:$0xff]  ;;  %v3320_v13 = vld [vmem:[%s3499_s20 + $0x58] sm:$0xff] }
 0x1e2   :  { %v680_v63 = vadd.f32 %v679_v44, %v650_v26 }
 0x1e3   :  { %v591_v50 = vadd.f32 %v588_v42, %v554_v36 }
 0x1e5   :  { %v596_v60 = vmul.f32 %v2021_v38, %v591_v50  ;;  %v2025_v50 = vld [vmem:[%s3641_s8] ss:$0 sm:$0xff] }
 0x1e7   :  { %v601_v62 = vadd.f32 %v2024_v53, %v596_v60 }
 0x1e8   :  { %v719_v51 = vpop.f32.mrf.mxu2 }
 0x1e9   :  { %v725_v31 = vadd.f32 %v719_v51, %v680_v63  ;;  %v603_v46 = vadd.f32 %v601_v62, %v3640_v33  ;;  %v2026_v62 = vld [vmem:[%s3642_s30] ss:$0 sm:$0xff] }
 0x1ea   :  { %v682_v52 = vpop.f32.mrf.mxu1 }
 0x1eb   :  { %v731_v54 = vmul.f32 %v2022_v35, %v725_v31  ;;  %v604_v56 = vmax.f32 %v603_v46, 0.0  ;;  %v683_v27 = vadd.f32 %v682_v52, %v653_v49 }
 0x1ed   :  { %v737_v61 = vadd.f32 %v2023_v45, %v731_v54  ;;  %1123 = vrot.lane.b32.xlu0 %v604_v56, %s2040_s2  ;;  %v2027_v56 = vld [vmem:[%s3490_s9] ss:$0 sm:$0xff] }
 0x1ef   :  { %v739_v58 = vmax.f32 %v737_v61, 0.0 }
 0x1f0   :  { %v722_v2 = vpop.f32.mrf.mxu2 }
 0x1f1   :  { %741 = vst.msk [vmem:[#allocation2 + $0x13] sm:$0xff] %vm76_vm0, %v739_v58  ;;  %v726_v7 = vadd.f32 %v722_v2, %v683_v27  ;;  %v2028_v2 = vld [vmem:[%s3491_s10] ss:$0 sm:$0xff] }
 0x1f3   :  { %v732_v3 = vmul.f32 %v2022_v35, %v726_v7 }
 0x1f5   :  { %v738_v5 = vadd.f32 %v2023_v45, %v732_v3 }
 0x1f7   :  { %v740_v9 = vmax.f32 %v738_v5, 0.0 }
 0x1f8   :  { %v754_v12 = vld [vmem:[#allocation2 + $0x13] sm:$0xff] }
 0x1f9   :  { %v743_v14 = vld [vmem:[#allocation2 + $0x12] sm:$0xff]  ;;  %742 = vst.msk [vmem:[#allocation2 + $0x1b] sm:$0xff] %vm76_vm0, %v740_v9  ;;  %1886 = vmatmul.msk.f32.vlgmr.msrb.gmra.mxu3 %vm76_vm0, %v754_v12  ;;  %v925_v33 = vpop.f32.mrf.mxu2 }
 0x1fa   :  { %1888 = vmatmul.msk.f32.vlgmr.msra.gmra.mxu0 %vm76_vm0, %v743_v14  ;;  %1086 = vmatpush.msrb.mxu3 %v2814_v40  ;;  %v1118_v40 = vld [vmem:[%s3495_s14 + $0x20] sm:$0xff] }
 0x1fb   :  { %1136 = vmatpush.msra.mxu0 %v1121_v11  ;;  %v3195_v14 = vld [vmem:[%s3498_s19] sm:$0xff] }
 0x1fc   :  { %1087 = vmatpush.msrb.mxu3 %v2832_v47 }
 0x1fd   :  { %1137 = vmatpush.msra.mxu0 %v1120_v15 }
 0x1fe   :  { %1088 = vmatpush.msrb.mxu3 %v2850_v57  ;;  %v1116_v57 = vld [vmem:[%s3495_s14 + $0x10] sm:$0xff] }
 0x1ff   :  { %1138 = vmatpush.msra.mxu0 %v1119_v18 }
 0x200   :  { %1089 = vmatpush.msrb.mxu3 %v2868_v30  ;;  %v755_v47 = vld [vmem:[#allocation2 + $0x1b] sm:$0xff]  ;;  %v363_v30 = vadd.f32 %v2018_v32, %v357_v6  ;;  %v3238_v6 = vld [vmem:[%s3499_s20 + $0xa8] sm:$0xff] }
 0x201   :  { %v744_v1 = vld [vmem:[#allocation2 + $0x1a] sm:$0xff]  ;;  %1139 = vmatpush.msra.mxu0 %v1118_v40  ;;  %1887 = vmatmul.msk.f32.gmra.mxu3 %vm76_vm0, %v755_v47 }
 0x202   :  { %v823_v25 = vld [vmem:[#allocation2 + $0x14] sm:$0xff]  ;;  %1889 = vmatmul.msk.f32.gmra.mxu0 %vm76_vm0, %v744_v1  ;;  %1090 = vmatpush.msrb.mxu3 %v2886_v59  ;;  %v883_v59 = vld [vmem:[%s3602_s4 + $0xa] sm:$0xff]  ;;  %v367_v10 = vadd.f32 %v363_v30, %v3644_v43  ;;  %v824_v23 = vld [vmem:[#allocation2 + $0x1c] sm:$0xff] }
 0x203   :  { %1899 = vmatmul.msk.f32.vlgmr.msra.gmra.mxu1 %vm76_vm0, %v823_v25  ;;  %1140 = vmatpush.msra.mxu0 %v1117_v24  ;;  %v3250_v47 = vld [vmem:[%s3499_s20 + $0x98] sm:$0xff]  ;;  %v3256_v1 = vld [vmem:[%s3499_s20 + $0x90] sm:$0xff]  ;;  %v2029_v25 = vld [vmem:[%s3496_s15] ss:$0 sm:$0xff] }
 0x204   :  { %1091 = vmatpush.msrb.mxu3 %v2904_v29  ;;  %v1114_v29 = vld [vmem:[%s3495_s14] sm:$0xff]  ;;  %v3154_v26 = vmax.f32 %v367_v10, 0.0  ;;  %v3301_v43 = vld [vmem:[%s3500_s17 + $0x8] sm:$0xff] }
 0x205   :  { %1141 = vmatpush.msra.mxu0 %v1116_v57  ;;  %v3306_v10 = vld [vmem:[%s3499_s20 + $0x68] sm:$0xff] }
 0x206   :  { %1092 = vmatpush.msrb.mxu3 %v3643_v39  ;;  %v3283_v39 = vld [vmem:[%s3499_s20 + $0x80] sm:$0xff] }
 0x207   :  { %1142 = vmatpush.msra.mxu0 %v1115_v34 }
 0x208   :  { %1093 = vmatpush.msrb.mxu3 %v2927_v0  ;;  %v3157_v0 = vmax.f32 %v366_v19, 0.0  ;;  %v3326_v19 = vld [vmem:[%s3499_s20 + $0x50] sm:$0xff] }
 0x209   :  { %1912 = vmatmul.msk.f32.vlgmr.msra.gmra.mxu3 %vm83_vm1, %v883_v59  ;;  %1143 = vmatpush.msra.mxu0 %v1114_v29  ;;  %v3289_v59 = vld [vmem:[%s3499_s20 + $0x78] sm:$0xff] }
 0x20a   :  { %1923 = vmatmul.msk.f32.vlgmr.msrb.gmra.mxu0 %vm83_vm1, %v951_v41  ;;  %1094 = vmatpush.msrb.mxu3 %v2935_v4  ;;  %v3295_v41 = vld [vmem:[%s3499_s20 + $0x70] sm:$0xff] }
 0x20b   :  { %1900 = vmatmul.msk.f32.gmra.mxu1 %vm76_vm0, %v824_v23  ;;  %1455 = vmatpush.msrb.mxu0 %v1121_v11  ;;  %v3332_v23 = vld [vmem:[%s3499_s20 + $0x48] sm:$0xff] }
 0x20c   :  { %1095 = vmatpush.msrb.mxu3 %v2943_v55 }
 0x20d   :  { %1456 = vmatpush.msrb.mxu0 %v1120_v15  ;;  %v3200_v15 = vld [vmem:[%s3499_s20 + $0xd0] sm:$0xff] }
 0x20e   :  { %1265 = vmatpush.msra.mxu3 %v3154_v26 }
 0x20f   :  { %1457 = vmatpush.msrb.mxu0 %v1119_v18  ;;  %v3213_v18 = vld [vmem:[%s3499_s20 + $0xc0] sm:$0xff] }
 0x210   :  { %1266 = vmatpush.msra.mxu3 %v3157_v0 }
 0x211   :  { %1458 = vmatpush.msrb.mxu0 %v1118_v40  ;;  %v3230_v40 = vld [vmem:[%s3499_s20 + $0xb0] sm:$0xff] }
 0x213   :  { %1459 = vmatpush.msrb.mxu0 %v1117_v24  ;;  %v3244_v24 = vld [vmem:[%s3499_s20 + $0xa0] sm:$0xff] }
 0x215   :  { %1460 = vmatpush.msrb.mxu0 %v1116_v57 }
 0x217   :  { %1461 = vmatpush.msrb.mxu0 %v1115_v34  ;;  %v3271_v34 = vld [vmem:[%s3500_s17] sm:$0xff] }
 0x219   :  { %1462 = vmatpush.msrb.mxu0 %v1114_v29  ;;  %v3314_v29 = vld [vmem:[%s3499_s20 + $0x60] sm:$0xff] }
 0x25f   :  { %v3161_v4 = vpop.permute.xlu0 %1123 }
 0x260   :  { %1947 = vmatmul.msk.f32.vlgmr.msra.gmra.mxu0 %vm1125_vm3, %v3161_v4 }
 0x277   :  { %v817_v55 = vpop.f32.mrf.mxu0 }
 0x27c   :  { %v788_v36 = vpop.f32.mrf.mxu3 }
 0x27d   :  { %v818_v38 = vadd.f32 %v817_v55, %v788_v36  ;;  %v1193_v55 = vld [vmem:[%s3501_s18 + $0x18] sm:$0xff]  ;;  %v1192_v36 = vld [vmem:[%s3501_s18 + $0x10] sm:$0xff] }
 0x27e   :  { %1213 = vmatpush.msra.mxu2 %v1193_v55 }
 0x27f   :  { %v820_v53 = vpop.f32.mrf.mxu0 }
 0x280   :  { %v857_v42 = vpop.f32.mrf.mxu1  ;;  %1214 = vmatpush.msra.mxu2 %v1192_v36 }
 0x281   :  { %v863_v44 = vadd.f32 %v857_v42, %v818_v38  ;;  %v1191_v38 = vld [vmem:[%s3501_s18 + $0x8] sm:$0xff] }
 0x282   :  { %1215 = vmatpush.msra.mxu2 %v1191_v38 }
 0x283   :  { %v869_v35 = vmul.f32 %v2025_v50, %v863_v44 }
 0x284   :  { %v791_v60 = vpop.f32.mrf.mxu3 }
 0x285   :  { %v821_v63 = vadd.f32 %v820_v53, %v791_v60  ;;  %v875_v16 = vadd.f32 %v2026_v62, %v869_v35  ;;  %v2031_v60 = vld [vmem:[%s3493_s12] ss:$0 sm:$0xff] }
 0x286   :  { %v2032_v35 = vld [vmem:[%s3494_s13] ss:$0 sm:$0xff] }
 0x287   :  { %v982_v52 = vpop.f32.mrf.mxu0  ;;  %v879_v61 = vadd.f32 %v875_v16, %v2969_v8 }
 0x288   :  { %v860_v51 = vpop.f32.mrf.mxu1 }
 0x289   :  { %v864_v31 = vadd.f32 %v860_v51, %v821_v63  ;;  %v3182_v5 = vmax.f32 %v879_v61, 0.0  ;;  %v1277_v61 = vld [vmem:[%s3499_s20 + $0x30] sm:$0xff] }
 0x28b   :  { %v870_v45 = vmul.f32 %v2025_v50, %v864_v31 }
 0x28c   :  { %v948_v49 = vpop.f32.mrf.mxu3 }
 0x28d   :  { %v876_v46 = vadd.f32 %v2026_v62, %v870_v45  ;;  %v949_v54 = vadd.f32 %v948_v49, %v925_v33  ;;  %v1190_v49 = vld [vmem:[%s3501_s18] sm:$0xff] }
 0x28e   :  { %1216 = vmatpush.msra.mxu2 %v1190_v49 }
 0x28f   :  { %v880_v27 = vadd.f32 %v876_v46, %v2991_v20  ;;  %v985_v58 = vadd.f32 %v982_v52, %v949_v54  ;;  %v1966_v46 = vld [vmem:[%s3498_s19 + $0x10] sm:$0xff]  ;;  %v1279_v54 = vld [vmem:[%s3499_s20 + $0x40] sm:$0xff] }
 0x291   :  { %v3180_v7 = vmax.f32 %v880_v27, 0.0  ;;  %v990_v3 = vmul.f32 %v2027_v56, %v985_v58  ;;  %v1278_v56 = vld [vmem:[%s3499_s20 + $0x38] sm:$0xff]  ;;  %v1276_v27 = vld [vmem:[%s3499_s20 + $0x28] sm:$0xff]  ;;  %v1275_v58 = vld [vmem:[%s3499_s20 + $0x20] sm:$0xff] }
 0x293   :  { %1615 = vmatpush.msra.mxu0 %v3180_v7  ;;  %v995_v9 = vadd.f32 %v2028_v2, %v990_v3  ;;  %v1274_v2 = vld [vmem:[%s3499_s20 + $0x18] sm:$0xff]  ;;  %v1273_v3 = vld [vmem:[%s3499_s20 + $0x10] sm:$0xff] }
 0x295   :  { %1616 = vmatpush.msra.mxu0 %v3182_v5  ;;  %v996_v11 = vmax.f32 %v995_v9, 0.0  ;;  %v1272_v9 = vld [vmem:[%s3499_s20 + $0x8] sm:$0xff] }
 0x297   :  { %997 = vst.msk [vmem:[#allocation3 + $0xb] sm:$0xff] %vm83_vm1, %v996_v11  ;;  %v1271_v11 = vld [vmem:[%s3499_s20] sm:$0xff]  ;;  %s2041_s20 = smov 4  }
 0x29e   :  { %v1009_v8 = vld [vmem:[#allocation3 + $0xb] sm:$0xff] }
 0x29f   :  { %v998_v20 = vld [vmem:[#allocation3 + $0xa] sm:$0xff]  ;;  %1934 = vmatmul.msk.f32.vlgmr.msrb.gmra.mxu1 %vm83_vm1, %v1009_v8 }
 0x2a0   :  { %v1066_v12 = vld [vmem:[#allocation3 + $0xc] sm:$0xff]  ;;  %1935 = vmatmul.msk.f32.vlgmr.msrb.gmra.mxu2 %vm83_vm1, %v998_v20 }
 0x2a1   :  { %1946 = vmatmul.msk.f32.vlgmr.msrb.gmra.mxu3 %vm83_vm1, %v1066_v12  ;;  %1348 = vmatpush.msrb.mxu2 %v1279_v54 }
 0x2a2   :  { %1299 = vmatpush.msrb.mxu3 %v3154_v26 }
 0x2a3   :  { %1349 = vmatpush.msrb.mxu2 %v1278_v56 }
 0x2a4   :  { %1300 = vmatpush.msrb.mxu3 %v3157_v0 }
 0x2a5   :  { %1350 = vmatpush.msrb.mxu2 %v1277_v61 }
 0x2a7   :  { %1351 = vmatpush.msrb.mxu2 %v1276_v27 }
 0x2a9   :  { %1952 = vmatmul.msk.f32.vlgmr.msra.gmra.mxu3 %vm1247_vm5, %v3195_v14  ;;  %1352 = vmatpush.msrb.mxu2 %v1275_v58 }
 0x2aa   :  { %1406 = vmatpush.msra.mxu3 %v3200_v15 }
 0x2ab   :  { %1353 = vmatpush.msrb.mxu2 %v1274_v2 }
 0x2ac   :  { %1407 = vmatpush.msra.mxu3 %v3207_v17 }
 0x2ad   :  { %1354 = vmatpush.msrb.mxu2 %v1273_v3 }
 0x2ae   :  { %1408 = vmatpush.msra.mxu3 %v3213_v18 }
 0x2af   :  { %1355 = vmatpush.msrb.mxu2 %v1272_v9 }
 0x2b0   :  { %1409 = vmatpush.msra.mxu3 %v3219_v21 }
 0x2b1   :  { %1954 = vmatmul.msk.f32.vlgmr.msrb.gmra.mxu3 %vm1247_vm5, %v3225_v22  ;;  %1356 = vmatpush.msrb.mxu2 %v1271_v11 }
 0x2b2   :  { %1410 = vmatpush.msra.mxu3 %v3230_v40 }
 0x2b4   :  { %1411 = vmatpush.msra.mxu3 %v3238_v6 }
 0x2b6   :  { %1412 = vmatpush.msra.mxu3 %v3244_v24 }
 0x2b8   :  { %1413 = vmatpush.msra.mxu3 %v3250_v47 }
 0x2ba   :  { %1414 = vmatpush.msra.mxu3 %v3256_v1 }
 0x2bc   :  { %1582 = vmatpush.msrb.mxu3 %v3180_v7 }
 0x2be   :  { %1583 = vmatpush.msrb.mxu3 %v3182_v5 }
 0x2dd   :  { %v1145_v32 = vpop.f32.mrf.mxu0 }
 0x2de   :  { %v1152_v57 = vmul.f32 %v2029_v25, %v1145_v32 }
 0x2e0   :  { %v1157_v30 = vadd.f32 %v2030_v28, %v1152_v57  ;;  %v2036_v28 = vld [vmem:[%s3503_s22] ss:$0 sm:$0xff] }
 0x2e2   :  { %1182 = vmatpush.msra.mxu1 %v1157_v30 }
 0x2e3   :  { %1948 = vmatmul.msk.f32.vlgmr.msra.gmra.mxu1 %vm1160_vm6, %v3271_v34 }
 0x2e4   :  { %1325 = vmatpush.msrb.mxu1 %v3276_v37 }
 0x2e6   :  { %1326 = vmatpush.msrb.mxu1 %v3283_v39 }
 0x2e8   :  { %1327 = vmatpush.msrb.mxu1 %v3289_v59 }
 0x2ea   :  { %1328 = vmatpush.msrb.mxu1 %v3295_v41 }
 0x2eb   :  { %1949 = vmatmul.msk.f32.gmra.mxu1 %vm1160_vm6, %v3301_v43 }
 0x2ec   :  { %1329 = vmatpush.msrb.mxu1 %v3306_v10 }
 0x2ee   :  { %1330 = vmatpush.msrb.mxu1 %v3314_v29 }
 0x2f0   :  { %1331 = vmatpush.msrb.mxu1 %v3320_v13 }
 0x2f2   :  { %1332 = vmatpush.msrb.mxu1 %v3326_v19 }
 0x2f4   :  { %1333 = vmatpush.msrb.mxu1 %v3332_v23 }
 0x2f6   :  { %1380 = vmatpush.msra.mxu1 %v3154_v26 }
 0x2f8   :  { %1381 = vmatpush.msra.mxu1 %v3157_v0 }
 0x31c   :  { %v1040_v42 = vpop.f32.mrf.mxu1 }
 0x323   :  { %v1063_v44 = vpop.f32.mrf.mxu2 }
 0x324   :  { %v1064_v50 = vadd.f32 %v1063_v44, %v1040_v42  ;;  %v1097_v53 = vpop.f32.mrf.mxu3 }
 0x326   :  { %v1100_v63 = vadd.f32 %v1097_v53, %v1064_v50  ;;  %v2037_v53 = vld [vmem:[%s3502_s21] ss:$0 sm:$0xff] }
 0x328   :  { %v1105_v62 = vmul.f32 %v2031_v60, %v1100_v63  ;;  %v2038_v63 = vld [vmem:[%s3503_s22] ss:$0 sm:$0xff] }
 0x32a   :  { %v1110_v51 = vadd.f32 %v2032_v35, %v1105_v62 }
 0x32c   :  { %v1268_v31 = vpop.f32.mrf.mxu3  ;;  %v1112_v16 = vadd.f32 %v1110_v51, %v3090_v48 }
 0x32e   :  { %v1113_v45 = vmax.f32 %v1112_v16, 0.0 }
 0x330   :  { %1443 = vrot.lane.b32.xlu0 %v1113_v45, %s2040_s2 }
 0x334   :  { %v1302_v33 = vpop.f32.mrf.mxu3 }
 0x335   :  { %1964 = vmatmul.msk.f32.vlgmr.msrb.gmra.mxu1 %vm76_vm0, %v1302_v33 }
 0x33d   :  { %1967 = vmatmul.msk.f32.vlgmr.msra.gmra.mxu1 %vm1247_vm5, %v1966_v46 }
 0x360   :  { %v1184_v52 = vpop.f32.mrf.mxu1 }
 0x361   :  { %1950 = vmatmul.msk.f32.vlgmr.msra.gmra.mxu2 %vm1194_vm7, %v1184_v52 }
 0x362   :  { %1530 = vmatpush.msra.mxu2 %v1193_v55 }
 0x364   :  { %1531 = vmatpush.msra.mxu2 %v1192_v36 }
 0x366   :  { %1532 = vmatpush.msra.mxu2 %v1191_v38 }
 0x368   :  { %v1187_v48 = vpop.f32.mrf.mxu1  ;;  %1533 = vmatpush.msra.mxu2 %v1190_v49 }
 0x369   :  { %1951 = vmatmul.msk.f32.gmra.mxu2 %vm1194_vm7, %v1187_v48 }
 0x371   :  { %1965 = vmatmul.msk.f32.vlgmr.msrb.gmra.mxu2 %vm76_vm0, %v1268_v31 }
 0x372   :  { %1663 = vmatpush.msrb.mxu2 %v1279_v54 }
 0x374   :  { %1664 = vmatpush.msrb.mxu2 %v1278_v56 }
 0x376   :  { %1665 = vmatpush.msrb.mxu2 %v1277_v61 }
 0x378   :  { %1666 = vmatpush.msrb.mxu2 %v1276_v27 }
 0x37a   :  { %1667 = vmatpush.msrb.mxu2 %v1275_v58 }
 0x37c   :  { %1668 = vmatpush.msrb.mxu2 %v1274_v2 }
 0x37e   :  { %1669 = vmatpush.msrb.mxu2 %v1273_v3 }
 0x380   :  { %1670 = vmatpush.msrb.mxu2 %v1272_v9 }
 0x382   :  { %1671 = vmatpush.msrb.mxu2 %v1271_v11 }
 0x3a2   :  { %v3393_v8 = vpop.permute.xlu0 %1443 }
 0x3a3   :  { %1978 = vmatmul.msk.f32.vlgmr.msrb.gmra.mxu0 %vm1125_vm3, %v3393_v8 }
 0x3a4   :  { %1719 = vmatpush.msrb.mxu0 %v3200_v15 }
 0x3a6   :  { %1720 = vmatpush.msrb.mxu0 %v3207_v17 }
 0x3a8   :  { %1721 = vmatpush.msrb.mxu0 %v3213_v18  ;;  %v2033_v18 = vld [vmem:[%s3496_s15] ss:$0 sm:$0xff] }
 0x3aa   :  { %1722 = vmatpush.msrb.mxu0 %v3219_v21  ;;  %v2034_v21 = vld [vmem:[%s3497_s16] ss:$0 sm:$0xff] }
 0x3ab   :  { %1985 = vmatmul.msk.f32.vlgmr.msra.gmra.mxu0 %vm1247_vm5, %v3225_v22 }
 0x3ac   :  { %1723 = vmatpush.msrb.mxu0 %v3230_v40 }
 0x3ae   :  { %1724 = vmatpush.msrb.mxu0 %v3238_v6 }
 0x3b0   :  { %1725 = vmatpush.msrb.mxu0 %v3244_v24 }
 0x3b2   :  { %v1335_v20 = vpop.f32.mrf.mxu1  ;;  %1726 = vmatpush.msrb.mxu0 %v3250_v47  ;;  %v2035_v47 = vld [vmem:[%s3502_s21] ss:$0 sm:$0xff] }
 0x3b4   :  { %1727 = vmatpush.msrb.mxu0 %v3256_v1 }
 0x3ba   :  { %v1383_v12 = vpop.f32.mrf.mxu1 }
 0x3bb   :  { %1977 = vmatmul.msk.f32.vlgmr.msra.gmra.mxu3 %vm76_vm0, %v1383_v12 }
 0x3bc   :  { %1694 = vmatpush.msra.mxu3 %v3180_v7 }
 0x3be   :  { %1695 = vmatpush.msra.mxu3 %v3182_v5 }
 0x3c3   :  { %1983 = vmatmul.msk.f32.vlgmr.msrb.gmra.mxu3 %vm1247_vm5, %v3195_v14 }
 0x3cb   :  { %1998 = vmatmul.msk.f32.vlgmr.msra.gmra.mxu3 %vm1247_vm5, %v1966_v46 }
 0x3e4   :  { %v1218_v15 = vpop.f32.mrf.mxu2 }
 0x3e5   :  { %1226 = vrot.lane.b32.xlu1 %v1218_v15, %s2041_s20 }
 0x3ec   :  { %v1221_v17 = vpop.f32.mrf.mxu2 }
 0x3ed   :  { %1228 = vrot.lane.b32.xlu1 %v1221_v17, %s2041_s20 }
 0x3f4   :  { %v1358_v6 = vpop.f32.mrf.mxu2 }
 0x3f5   :  { %v1359_v24 = vadd.f32 %v1358_v6, %v1335_v20 }
 0x420   :  { %v1464_v22 = vpop.f32.mrf.mxu0 }
 0x421   :  { %v1471_v40 = vmul.f32 %v2033_v18, %v1464_v22 }
 0x423   :  { %v1476_v14 = vadd.f32 %v2034_v21, %v1471_v40 }
 0x425   :  { %1500 = vmatpush.msrb.mxu1 %v1476_v14 }
 0x426   :  { %1979 = vmatmul.msk.f32.vlgmr.msrb.gmra.mxu1 %vm1160_vm6, %v3271_v34 }
 0x427   :  { %1640 = vmatpush.msra.mxu1 %v3276_v37 }
 0x429   :  { %1641 = vmatpush.msra.mxu1 %v3283_v39 }
 0x42b   :  { %1642 = vmatpush.msra.mxu1 %v3289_v59 }
 0x42d   :  { %1643 = vmatpush.msra.mxu1 %v3295_v41 }
 0x42e   :  { %1980 = vmatmul.msk.f32.gmra.mxu1 %vm1160_vm6, %v3301_v43 }
 0x42f   :  { %1644 = vmatpush.msra.mxu1 %v3306_v10 }
 0x431   :  { %1645 = vmatpush.msra.mxu1 %v3314_v29 }
 0x433   :  { %1646 = vmatpush.msra.mxu1 %v3320_v13  ;;  %v1618_v13 = vpop.f32.mrf.mxu0 }
 0x435   :  { %1647 = vmatpush.msra.mxu1 %v3326_v19 }
 0x437   :  { %1648 = vmatpush.msra.mxu1 %v3332_v23 }
 0x438   :  { %1995 = vmatmul.msk.f32.vlgmr.msra.gmra.mxu1 %vm76_vm0, %v1618_v13 }
 0x43e   :  { %v1416_v1 = vpop.f32.mrf.mxu3 }
 0x43f   :  { %v1419_v25 = vadd.f32 %v1416_v1, %v1359_v24 }
 0x441   :  { %v1424_v32 = vmul.f32 %v2035_v47, %v1419_v25 }
 0x443   :  { %v1429_v57 = vadd.f32 %v2036_v28, %v1424_v32 }
 0x445   :  { %v1431_v30 = vadd.f32 %v1429_v57, %v3161_v4 }
 0x446   :  { %v1585_v29 = vpop.f32.mrf.mxu3 }
 0x447   :  { %v1432_v34 = vmax.f32 %v1431_v30, 0.0 }
 0x449   :  { %1433 = vst.msk [vmem:[%s3504_s24] sm:$0xff] %vm1125_vm3, %v1432_v34 }
 0x44e   :  { %v1697_v4 = vpop.f32.mrf.mxu3 }
 0x44f   :  { %2008 = vmatmul.msk.f32.vlgmr.msrb.gmra.mxu0 %vm76_vm0, %v1697_v4 }
 0x457   :  { %v1227_v37 = vpop.permute.xlu1 %1226 }
 0x458   :  { %v1232_v39 = vadd.f32 %v1227_v37, %v3157_v0 }
 0x45a   :  { %v1234_v59 = vmax.f32 %v1232_v39, 0.0 }
 0x45c   :  { %1238 = vrot.lane.b32.xlu0 %v1234_v59, %s2042_s1 }
 0x45f   :  { %v1229_v41 = vpop.permute.xlu1 %1228 }
 0x460   :  { %v1233_v43 = vadd.f32 %v1229_v41, %v3154_v26 }
 0x462   :  { %v1235_v10 = vmax.f32 %v1233_v43, 0.0 }
 0x464   :  { %1240 = vrot.lane.b32.xlu1 %v1235_v10, %s2042_s1 }
 0x4a3   :  { %v1502_v19 = vpop.f32.mrf.mxu1 }
 0x4a4   :  { %1981 = vmatmul.msk.f32.vlgmr.msra.gmra.mxu2 %vm1194_vm7, %v1502_v19 }
 0x4ab   :  { %v1505_v23 = vpop.f32.mrf.mxu1 }
 0x4ac   :  { %1982 = vmatmul.msk.f32.gmra.mxu2 %vm1194_vm7, %v1505_v23 }
 0x4b4   :  { %1996 = vmatmul.msk.f32.vlgmr.msrb.gmra.mxu2 %vm76_vm0, %v1585_v29 }
 0x4b5   :  { %v1650_v38 = vpop.f32.mrf.mxu1 }
 0x4cc   :  { %v1729_v44 = vpop.f32.mrf.mxu0 }
 0x4ce   :  { %v1239_v0 = vpop.permute.xlu0 %1238 }
 0x4cf   :  { %1244 = vst.msk [vmem:[%s3505_s23] sm:$0xff] %vm1125_vm3, %v1239_v0 }
 0x4d6   :  { %v1241_v26 = vpop.permute.xlu1 %1240 }
 0x4d7   :  { %1245 = vst.msk [vmem:[%s3505_s23 + $0x8] sm:$0xff] %vm1125_vm3, %v1241_v26 }
 0x527   :  { %v1535_v55 = vpop.f32.mrf.mxu2 }
 0x528   :  { %1543 = vrot.lane.b32.xlu2 %v1535_v55, %s2041_s20 }
 0x52f   :  { %v1538_v36 = vpop.f32.mrf.mxu2 }
 0x530   :  { %1545 = vrot.lane.b32.xlu2 %v1538_v36, %s2041_s20 }
 0x537   :  { %v1673_v42 = vpop.f32.mrf.mxu2 }
 0x538   :  { %v1674_v50 = vadd.f32 %v1673_v42, %v1650_v38 }
 0x53a   :  { %v1732_v60 = vadd.f32 %v1729_v44, %v1674_v50 }
 0x53c   :  { %v1737_v35 = vmul.f32 %v2037_v53, %v1732_v60 }
 0x53e   :  { %v1742_v62 = vadd.f32 %v2038_v63, %v1737_v35 }
 0x540   :  { %v1744_v51 = vadd.f32 %v1742_v62, %v3393_v8 }
 0x542   :  { %v1745_v31 = vmax.f32 %v1744_v51, 0.0 }
 0x544   :  { %1747 = vrot.lane.b32.xlu1 %v1745_v31, %s2043_s11 }
 0x582   :  { %v1544_v16 = vpop.permute.xlu2 %1543 }
 0x583   :  { %v1549_v45 = vadd.f32 %v1544_v16, %v3182_v5 }
 0x585   :  { %v1551_v33 = vmax.f32 %v1549_v45, 0.0 }
 0x587   :  { %1555 = vrot.lane.b32.xlu2 %v1551_v33, %s2044_s3 }
 0x58a   :  { %v1546_v46 = vpop.permute.xlu2 %1545 }
 0x58b   :  { %v1550_v49 = vadd.f32 %v1546_v46, %v3180_v7 }
 0x58d   :  { %v1552_v52 = vmax.f32 %v1550_v49, 0.0 }
 0x58f   :  { %1557 = vrot.lane.b32.xlu0 %v1552_v52, %s2044_s3 }
 0x5b6   :  { %v1748_v48 = vpop.permute.xlu1 %1747 }
 0x5b7   :  { %1750 = vst.msk [vmem:[%s3504_s24] sm:$0xff] %vm1561_vm8, %v1748_v48 }
 0x5e1   :  { %v1556_v54 = vpop.permute.xlu2 %1555 }
 0x5e2   :  { %1562 = vst.msk [vmem:[%s3505_s23] sm:$0xff] %vm1561_vm8, %v1556_v54 }
 0x601   :  { %v1558_v5 = vpop.permute.xlu0 %1557 }
 0x602   :  { %1563 = vst.msk [vmem:[%s3505_s23 + $0x8] sm:$0xff] %vm1561_vm8, %v1558_v5 }

</bundles_post_ra>
